<compile_context>
chip_gen: v7x
topology: tpu7x:2x2x1
jax: 0.10.0
libtpu: 0.0.40
codegen_flags: <defaults>
</compile_context>

<pallas_src>
import functools

import jax
import jax.numpy as jnp
from jax.experimental import pallas as pl
from jax.experimental.pallas import tpu as pltpu

HEADS = 12            # hard-coded in the PyTorch module (torch.ones(12, ...))
HEAD_DIM = 64         # hard-coded in the PyTorch module
HEADS_PER_STEP = 6    # grid = (12//6,) = (2,): one step per v7x TC, 2 steps on v5e/v6e


def _attn_kernel(t_ref, o_ref, *, cache_len, use_softmax):
    # t_ref: (HP, S, B, D) — raw slab of T in the module's native layout.
    # o_ref: (HP, B, S, D) — result in the module's output layout (no repacking).
    hp, seq_len, bsz, d = t_ref.shape
    inv_d = jnp.float32(1.0 / HEAD_DIM)
    n_cache = jnp.float32(cache_len)

    # Static (unrolled) loop over the tiny batch axis: every matmul stays a
    # single-batch-dim einsum and the per-batch slice is a plain squeezed ref
    # read (sublane-dim index) — no 4D transposes anywhere in the kernel.
    for bi in range(bsz):
        q = t_ref[:, :, bi, :]                       # (HP, S, D) == T[h, :, bi, :]
        qs = q * inv_d                               # fold the /64 score scale into lhs

        # Scores vs. the "real" keys (k[..., :S] == q^T):
        s_self = jnp.einsum("hqd,hkd->hqk", qs, q,
                            preferred_element_type=jnp.float32)      # (HP, S, S)
        # Score vs. every all-ones cache key column (identical per row):
        s_cache = jnp.sum(qs, axis=-1, keepdims=True)                # (HP, S, 1)

        if use_softmax:
            m = jnp.maximum(jnp.max(s_self, axis=-1, keepdims=True), s_cache)
            e_self = jnp.exp(s_self - m)
            e_cache = jnp.exp(s_cache - m)
            denom = jnp.sum(e_self, axis=-1, keepdims=True) + n_cache * e_cache
            # EUP reciprocal + one Newton-Raphson step: moves the divide off the
            # VALU slot while keeping ~f32 accuracy (denom >= 1, well behaved).
            inv = pl.reciprocal(denom, approx=True)
            inv = inv * (2.0 - denom * inv)
            p_self = e_self * inv
            cache_w = (n_cache * e_cache) * inv       # total mass on the ones rows of v
        else:  # torch.nn.Identity()
            p_self = s_self
            cache_w = n_cache * s_cache

        # res = p[:, :S] @ v[:S] + p[:, S:] @ ones = p_self @ q + cache_w * 1
        o = jnp.einsum("hqk,hkd->hqd", p_self, q,
                       preferred_element_type=jnp.float32)
        o = o + cache_w                               # broadcast over the D lanes
        o_ref[:, bi, :, :] = o.astype(o_ref.dtype)


@functools.partial(jax.jit, static_argnums=1)
def attn_forward(T, cache_len):
    """T: (12, seq, batch, 64) -> (12, batch, seq, 64); matches Attn.forward."""
    H, S, B, D = T.shape
    assert H == HEADS and D == HEAD_DIM and H % HEADS_PER_STEP == 0
    HP = HEADS_PER_STEP
    use_softmax = ((cache_len + 1) % 16 == 0)

    kernel = functools.partial(_attn_kernel, cache_len=int(cache_len),
                               use_softmax=use_softmax)

    itemsize = jnp.dtype(T.dtype).itemsize
    cost = pl.CostEstimate(
        flops=4 * H * B * S * S * D,                       # the two real matmuls
        transcendentals=(H * B * S * (S + 1)) if use_softmax else 0,
        bytes_accessed=2 * H * B * S * D * itemsize,       # read T once, write res once
    )

    return pl.pallas_call(
        kernel,
        out_shape=jax.ShapeDtypeStruct((H, B, S, D), T.dtype),
        grid_spec=pltpu.PrefetchScalarGridSpec(
            num_scalar_prefetch=0,
            grid=(H // HP,),                               # (2,): even -> both v7x TCs busy
            in_specs=[pl.BlockSpec((HP, S, B, D), lambda i: (i, 0, 0, 0))],
            out_specs=pl.BlockSpec((HP, B, S, D), lambda i: (i, 0, 0, 0)),
        ),
        compiler_params=pltpu.CompilerParams(
            dimension_semantics=("parallel",)),
        # Blocks are tens of KB here; no vmem_limit needed.  For much larger
        # seq/cache_len, add a key-length grid axis (marked "arbitrary") with an
        # online-softmax m/l/acc scratch and size tiles against v7x's 64 MiB VMEM.
        cost_estimate=cost,
    )(T)


def attn_reference(T, cache_len):
    """Pure-JAX reference mirroring the PyTorch forward (materializes k and v)."""
    H, S, B, D = T.shape
    q = jnp.transpose(T, (0, 2, 1, 3))
    k = jnp.concatenate(
        [jnp.transpose(T, (0, 2, 3, 1)),
         jnp.ones((H, B, D, cache_len), T.dtype)], axis=3)
    v = jnp.concatenate(
        [jnp.transpose(T, (0, 2, 1, 3)),
         jnp.ones((H, B, cache_len, D), T.dtype)], axis=2)
    s = jnp.matmul(q, k) / k.shape[-2]
    if (cache_len + 1) % 16 == 0:
        s = jax.nn.softmax(s, axis=-1)
    return jnp.matmul(s, v)


if __name__ == "__main__":
    batch = 2
    seq = 8

    key = jax.random.PRNGKey(0)
    # Module input convention: T is (12, seq, batch, 64).
    T = jax.random.normal(key, (HEADS, seq, batch, HEAD_DIM), dtype=jnp.float32)

    # cache_len=15 -> (15+1)%16==0 -> softmax path; cache_len=7 -> identity path.
    for cache_len in (15, 7):
        out = jax.block_until_ready(attn_forward(T, cache_len))
        ref = attn_reference(T, cache_len)
        assert out.shape == (HEADS, batch, seq, HEAD_DIM)
        assert jnp.allclose(out, ref, atol=5e-5, rtol=5e-5), cache_len

    print("KERNEL_OK")
</pallas_src>

<mosaic_0001>
module attributes {stable_mosaic.version = 11 : i64} {
  func.func @_attn_kernel(%arg0: i32, %arg1: memref<6x8x2x64xf32, #tpu.memory_space<vmem>>, %arg2: memref<6x2x8x64xf32, #tpu.memory_space<vmem>>) attributes {dimension_semantics = [#tpu.dimension_semantics<parallel>], iteration_bounds = array<i64: 2>, scalar_prefetch = 0 : i64, scratch_operands = 0 : i64, tpu.core_type = #tpu.core_type<tc>, window_params = [{transform_indices = @transform_0, window_bounds = array<i64: 6, 8, 2, 64>}, {transform_indices = @transform_1, window_bounds = array<i64: 6, 2, 8, 64>}]} {
    %c0 = arith.constant 0 : index
    %c0_0 = arith.constant 0 : index
    %c0_1 = arith.constant 0 : index
    %c0_2 = arith.constant 0 : index
    %0 = vector.load %arg1[%c0, %c0_0, %c0_1, %c0_2] : memref<6x8x2x64xf32, #tpu.memory_space<vmem>>, vector<6x8x1x64xf32>
    %1 = vector.shape_cast %0 : vector<6x8x1x64xf32> to vector<6x8x64xf32>
    %cst = arith.constant 1.562500e-02 : f32
    %2 = vector.broadcast %cst : f32 to vector<6x8x64xf32>
    %3 = arith.mulf %1, %2 : vector<6x8x64xf32>
    "tpu.trace_start"() <{level = 10 : i32, message = "hqd,hkd->hqk"}> : () -> ()
    %cst_3 = arith.constant dense<0.000000e+00> : vector<6x8x8xf32>
    %4 = tpu.matmul %3, %1, %cst_3 {dimension_numbers = #tpu.dot_dimension_numbers<[2], [2], [1], [1], [0, 0, 0, 1, 1, 1], [0], [0]>} : vector<6x8x64xf32>, vector<6x8x64xf32>, vector<6x8x8xf32> -> vector<6x8x8xf32>
    "tpu.trace_stop"() : () -> ()
    %cst_4 = arith.constant dense<0.000000e+00> : vector<6x8xf32>
    %5 = vector.multi_reduction <add>, %3, %cst_4 [2] : vector<6x8x64xf32> to vector<6x8xf32>
    %6 = vector.shape_cast %5 : vector<6x8xf32> to vector<6x8x1xf32>
    %cst_5 = arith.constant dense<0xFF800000> : vector<6x8xf32>
    %7 = vector.multi_reduction <maximumf>, %4, %cst_5 [2] : vector<6x8x8xf32> to vector<6x8xf32>
    %8 = vector.shape_cast %7 : vector<6x8xf32> to vector<6x8x1xf32>
    %9 = arith.maximumf %8, %6 : vector<6x8x1xf32>
    %10 = vector.broadcast %9 : vector<6x8x1xf32> to vector<6x8x8xf32>
    %11 = arith.subf %4, %10 : vector<6x8x8xf32>
    %12 = math.exp %11 : vector<6x8x8xf32>
    %13 = arith.subf %6, %9 : vector<6x8x1xf32>
    %14 = math.exp %13 : vector<6x8x1xf32>
    %cst_6 = arith.constant dense<0.000000e+00> : vector<6x8xf32>
    %15 = vector.multi_reduction <add>, %12, %cst_6 [2] : vector<6x8x8xf32> to vector<6x8xf32>
    %16 = vector.shape_cast %15 : vector<6x8xf32> to vector<6x8x1xf32>
    %cst_7 = arith.constant 1.500000e+01 : f32
    %17 = vector.broadcast %cst_7 : f32 to vector<6x8x1xf32>
    %18 = arith.mulf %17, %14 : vector<6x8x1xf32>
    %19 = arith.addf %16, %18 : vector<6x8x1xf32>
    %20 = tpu.reciprocal %19 {approx = true} : vector<6x8x1xf32> -> vector<6x8x1xf32>
    %21 = arith.mulf %19, %20 : vector<6x8x1xf32>
    %cst_8 = arith.constant 2.000000e+00 : f32
    %22 = vector.broadcast %cst_8 : f32 to vector<6x8x1xf32>
    %23 = arith.subf %22, %21 : vector<6x8x1xf32>
    %24 = arith.mulf %20, %23 : vector<6x8x1xf32>
    %25 = vector.broadcast %24 : vector<6x8x1xf32> to vector<6x8x8xf32>
    %26 = arith.mulf %12, %25 : vector<6x8x8xf32>
    %cst_9 = arith.constant 1.500000e+01 : f32
    %27 = vector.broadcast %cst_9 : f32 to vector<6x8x1xf32>
    %28 = arith.mulf %27, %14 : vector<6x8x1xf32>
    %29 = arith.mulf %28, %24 : vector<6x8x1xf32>
    "tpu.trace_start"() <{level = 10 : i32, message = "hqk,hkd->hqd"}> : () -> ()
    %cst_10 = arith.constant dense<0.000000e+00> : vector<6x8x64xf32>
    %30 = tpu.matmul %26, %1, %cst_10 {dimension_numbers = #tpu.dot_dimension_numbers<[2], [1], [1], [2], [0, 0, 0, 1, 1, 2], [0], [0]>} : vector<6x8x8xf32>, vector<6x8x64xf32>, vector<6x8x64xf32> -> vector<6x8x64xf32>
    "tpu.trace_stop"() : () -> ()
    %31 = vector.broadcast %29 : vector<6x8x1xf32> to vector<6x8x64xf32>
    %32 = arith.addf %30, %31 : vector<6x8x64xf32>
    %c0_11 = arith.constant 0 : index
    %c0_12 = arith.constant 0 : index
    %c0_13 = arith.constant 0 : index
    %c0_14 = arith.constant 0 : index
    %33 = vector.load %arg2[%c0_11, %c0_12, %c0_13, %c0_14] : memref<6x2x8x64xf32, #tpu.memory_space<vmem>>, vector<6x1x8x64xf32>
    %34 = vector.shape_cast %33 : vector<6x1x8x64xf32> to vector<6x8x64xf32>
    %35 = vector.shape_cast %32 : vector<6x8x64xf32> to vector<6x1x8x64xf32>
    tpu.vector_store %arg2[%c0_11, %c0_12, %c0_13, %c0_14], %35 {strides = array<i32>} : memref<6x2x8x64xf32, #tpu.memory_space<vmem>>, vector<6x1x8x64xf32>,
    %c0_15 = arith.constant 0 : index
    %c0_16 = arith.constant 0 : index
    %c1 = arith.constant 1 : index
    %c0_17 = arith.constant 0 : index
    %36 = vector.load %arg1[%c0_15, %c0_16, %c1, %c0_17] : memref<6x8x2x64xf32, #tpu.memory_space<vmem>>, vector<6x8x1x64xf32>
    %37 = vector.shape_cast %36 : vector<6x8x1x64xf32> to vector<6x8x64xf32>
    %cst_18 = arith.constant 1.562500e-02 : f32
    %38 = vector.broadcast %cst_18 : f32 to vector<6x8x64xf32>
    %39 = arith.mulf %37, %38 : vector<6x8x64xf32>
    "tpu.trace_start"() <{level = 10 : i32, message = "hqd,hkd->hqk"}> : () -> ()
    %cst_19 = arith.constant dense<0.000000e+00> : vector<6x8x8xf32>
    %40 = tpu.matmul %39, %37, %cst_19 {dimension_numbers = #tpu.dot_dimension_numbers<[2], [2], [1], [1], [0, 0, 0, 1, 1, 1], [0], [0]>} : vector<6x8x64xf32>, vector<6x8x64xf32>, vector<6x8x8xf32> -> vector<6x8x8xf32>
    "tpu.trace_stop"() : () -> ()
    %cst_20 = arith.constant dense<0.000000e+00> : vector<6x8xf32>
    %41 = vector.multi_reduction <add>, %39, %cst_20 [2] : vector<6x8x64xf32> to vector<6x8xf32>
    %42 = vector.shape_cast %41 : vector<6x8xf32> to vector<6x8x1xf32>
    %cst_21 = arith.constant dense<0xFF800000> : vector<6x8xf32>
    %43 = vector.multi_reduction <maximumf>, %40, %cst_21 [2] : vector<6x8x8xf32> to vector<6x8xf32>
    %44 = vector.shape_cast %43 : vector<6x8xf32> to vector<6x8x1xf32>
    %45 = arith.maximumf %44, %42 : vector<6x8x1xf32>
    %46 = vector.broadcast %45 : vector<6x8x1xf32> to vector<6x8x8xf32>
    %47 = arith.subf %40, %46 : vector<6x8x8xf32>
    %48 = math.exp %47 : vector<6x8x8xf32>
    %49 = arith.subf %42, %45 : vector<6x8x1xf32>
    %50 = math.exp %49 : vector<6x8x1xf32>
    %cst_22 = arith.constant dense<0.000000e+00> : vector<6x8xf32>
    %51 = vector.multi_reduction <add>, %48, %cst_22 [2] : vector<6x8x8xf32> to vector<6x8xf32>
    %52 = vector.shape_cast %51 : vector<6x8xf32> to vector<6x8x1xf32>
    %cst_23 = arith.constant 1.500000e+01 : f32
    %53 = vector.broadcast %cst_23 : f32 to vector<6x8x1xf32>
    %54 = arith.mulf %53, %50 : vector<6x8x1xf32>
    %55 = arith.addf %52, %54 : vector<6x8x1xf32>
    %56 = tpu.reciprocal %55 {approx = true} : vector<6x8x1xf32> -> vector<6x8x1xf32>
    %57 = arith.mulf %55, %56 : vector<6x8x1xf32>
    %cst_24 = arith.constant 2.000000e+00 : f32
    %58 = vector.broadcast %cst_24 : f32 to vector<6x8x1xf32>
    %59 = arith.subf %58, %57 : vector<6x8x1xf32>
    %60 = arith.mulf %56, %59 : vector<6x8x1xf32>
    %61 = vector.broadcast %60 : vector<6x8x1xf32> to vector<6x8x8xf32>
    %62 = arith.mulf %48, %61 : vector<6x8x8xf32>
    %cst_25 = arith.constant 1.500000e+01 : f32
    %63 = vector.broadcast %cst_25 : f32 to vector<6x8x1xf32>
    %64 = arith.mulf %63, %50 : vector<6x8x1xf32>
    %65 = arith.mulf %64, %60 : vector<6x8x1xf32>
    "tpu.trace_start"() <{level = 10 : i32, message = "hqk,hkd->hqd"}> : () -> ()
    %cst_26 = arith.constant dense<0.000000e+00> : vector<6x8x64xf32>
    %66 = tpu.matmul %62, %37, %cst_26 {dimension_numbers = #tpu.dot_dimension_numbers<[2], [1], [1], [2], [0, 0, 0, 1, 1, 2], [0], [0]>} : vector<6x8x8xf32>, vector<6x8x64xf32>, vector<6x8x64xf32> -> vector<6x8x64xf32>
    "tpu.trace_stop"() : () -> ()
    %67 = vector.broadcast %65 : vector<6x8x1xf32> to vector<6x8x64xf32>
    %68 = arith.addf %66, %67 : vector<6x8x64xf32>
    %c0_27 = arith.constant 0 : index
    %c1_28 = arith.constant 1 : index
    %c0_29 = arith.constant 0 : index
    %c0_30 = arith.constant 0 : index
    %69 = vector.load %arg2[%c0_27, %c1_28, %c0_29, %c0_30] : memref<6x2x8x64xf32, #tpu.memory_space<vmem>>, vector<6x1x8x64xf32>
    %70 = vector.shape_cast %69 : vector<6x1x8x64xf32> to vector<6x8x64xf32>
    %71 = vector.shape_cast %68 : vector<6x8x64xf32> to vector<6x1x8x64xf32>
    tpu.vector_store %arg2[%c0_27, %c1_28, %c0_29, %c0_30], %71 {strides = array<i32>} : memref<6x2x8x64xf32, #tpu.memory_space<vmem>>, vector<6x1x8x64xf32>,
    return
  }
  func.func @transform_0(%arg0: i32) -> (i32, i32, i32, i32) {
    %c0_i32 = arith.constant 0 : i32
    %c0_i32_0 = arith.constant 0 : i32
    %c0_i32_1 = arith.constant 0 : i32
    %c0_i32_2 = arith.constant 0 : i32
    return %arg0, %c0_i32, %c0_i32_0, %c0_i32_1 : i32, i32, i32, i32
  }
  func.func @transform_1(%arg0: i32) -> (i32, i32, i32, i32) {
    %c0_i32 = arith.constant 0 : i32
    %c0_i32_0 = arith.constant 0 : i32
    %c0_i32_1 = arith.constant 0 : i32
    %c0_i32_2 = arith.constant 0 : i32
    return %arg0, %c0_i32, %c0_i32_0, %c0_i32_1 : i32, i32, i32, i32
  }
}

</mosaic_0001>

<bundles_post_ra>
// kernel: attn_forward.1
= control target key start
LH: loop header
LB: loop body
LE: loop exit
PB: predicated region body
PF: predicated region fallthrough
CT: control target
= control target key end

     0   :  { %6 = vsyncpa [#allocation3], 0  ;;  %s4379_s0 = inlined_call_operand.hbm [shape: f32[12,8,2,64], index: 0, kind: input, shape index: {}]   ;;  %s4380_s1 = inlined_call_operand.hbm [shape: f32[12,2,8,64], index: 1, kind: output, shape index: {}]  }
   0x1   :  { %8 = vsyncpa [#allocation3 + $0x1], 0 }
   0x2   :  { %9 = vsyncpa [#allocation4], 0 }
   0x3   :  { %11 = vsyncpa [#allocation4 + $0x1], 0  ;;  %s3512_s6 = smov 0   ;;  %s3514_s7 = smov 0  }
   0x4   :  { %s3516_s8 = smov 0   ;;  %s3518_s9 = smov 0  }
   0x5 LB: > { %s3533_s10 = sadd.s32 4294967295, %s3492_s9   ;;  %s3044_s11 = sadd.s32 4294967294, %s3492_s9   ;;  %s3492_s9 = sphi %s3518_s9, %s4392_s9   ;;  %s3488_s8 = sphi %s3516_s8, %s4391_s8   ;;  %s3484_s7 = sphi %s3514_s7, %s4390_s7   ;;  %s3480_s6 = sphi %s3512_s6, %s4389_s6  }
   0x6   : > { %s3537_s12 = sadd.s32 1, %s3492_s9   ;;  %s24_s13 = sadd.s32 1, %s3488_s8 }
   0x7   : > { %s21_s14 = ssub.s32 %s3492_s9, %s3537_s12  ;;  %p31_p0 = scmp.ne.s32.totalorder %s3488_s8, %s3484_s7 }
   0x8   : > { %p22_p1 = scmp.eq.s32.totalorder %s21_s14, 0  ;;  %p32_p2 = scmp.eq.s32.totalorder %s3492_s9, 0 }
   0x9   : > { %p37_p3 = scmp.ne.s32.totalorder %s3484_s7, %s3480_s6  ;;  %p38_p4 = scmp.eq.s32.totalorder %s3533_s10, 0 }
   0xa   : > { %s3549_s15 = scalar_select %p22_p1, %s3488_s8, %s24_s13  }
   0xb   : > { %p33_p5 = por %p32_p2, %p31_p0  ;;  %p3551_p6 = por %p38_p4, %p37_p3 }
   0xc   : > { %p61_p7 = scmp.eq.s32.totalorder %s3533_s10, 1  ;;  %p67_p8 = scmp.eq.s32.totalorder %s3044_s11, 1 }
   0xd   : > { %p3284_p10 = scmp.lt.s32.totalorder %s3492_s9, 2  ;;  %s87_s19 = sand.u32 1, %s3488_s8  }
   0xe   : > { %p3558_p11 = por %p61_p7, %p31_p0  ;;  %p3562_p12 = por %p67_p8, %p37_p3 }
   0xf   : > { %s3100_s20 = smul.u32 1536, %s3492_s9  ;;  %p3573_p13 = pnand %p3284_p10, %p33_p5 }
  0x10   : > { %s4383_s17 = scalar_select %p3558_p11, 1, 0 }
  0x11   : > { %s4384_s18 = scalar_select %p3562_p12, 1, 0 }
  0x12   : > { %s3270_s21 = smul.u32 96, %s87_s19  ;;  %s3571_s24 = scalar_lea.hbm %s4379_s0, %s3100_s20 }
  0x13   : > { %s3579_s28 = scalar_lea.sflag [#allocation3], %s87_s19  ;;  %s3396_s29 = scalar_lea.hbm %s3571_s24, 1536 }
  0x14   : > { %s91_s26 = scalar_lea.vmem [#allocation2], %s3270_s21  ;;  %p3397_p0 = scmp.ne.s32.totalorder %s3571_s24, %s3396_s29 }
  0x15   : > { %s99_s27 = sshll.u32 %s91_s26, 4  ;;  %p3398_p1 = pneg %p3573_p13  ;;  %s3577_s27 = int_to_ptr.vmem [resolvable:$true] %s99_s27 }
  0x16   : > { %s3401_s3 = scalar_lea.hbm %s4379_s0, 3072  ;;  %p3402_p4 = scmp.lt.u32.totalorder %s3571_s24, %s4379_s0 }
  0x17   : > { %p3399_p2 = pnand %p3398_p1, %p3397_p0  ;;  %p3403_p5 = scmp.lt.u32.totalorder %s3401_s3, %s3396_s29 }
  0x18   : > { %p3405_p8 = scmp.lt.u32.totalorder %s3396_s29, %s3571_s24 }
  0x19   : > { %p3400_p3 = pneg %p3399_p2  ;;  %p3404_p7 = por %p3403_p5, %p3402_p4 }
  0x1b   : > { %p3406_p10 = por %p3405_p8, %p3404_p7 }
  0x1d   : > { %p3407_p9 = pnand %p3406_p10, %p3400_p3 }
  0x1f   : > { %3410 = shalt.err (!%p3407_p9)
}
  0x20   : > { %s3411_s11 = scalar_lea.vmem %s3577_s27, 1536  ;;  %s3494_s13 = smov [#allocation2]  }
  0x21   : > { %p3412_p0 = scmp.ne.s32.totalorder %s3577_s27, %s3411_s11  ;;  %s3416_s14 = sshll.u32 %s3494_s13, 4  ;;  %s3417_s14 = int_to_ptr.vmem [resolvable:$false] %s3416_s14 }
  0x22   : > { %s3418_s19 = scalar_lea.vmem %s3417_s14, 3072  ;;  %p3419_p11 = scmp.lt.s32.totalorder %s3577_s27, %s3417_s14 }
  0x23   : > { %p3414_p2 = pnand %p3412_p0, %p3398_p1  ;;  %p3420_p4 = scmp.lt.s32.totalorder %s3418_s19, %s3411_s11 }
  0x25   : > { %p3415_p12 = pneg %p3414_p2  ;;  %p3421_p5 = por %p3420_p4, %p3419_p11 }
  0x27   : > { %p3422_p7 = pnand %p3421_p5, %p3415_p12 }
  0x29   : > { %3425 = shalt.err (!%p3422_p7)
}
  0x2a   : > { %s3495_s20 = smov 32   ;;  %s3496_s21 = smov 2  }
  0x2b   : > { %3279 = dma.hbm_to_vmem [thread:$0]  (!%p3573_p13), %s3571_s24, 1536, %s3577_s27, %s3579_s28, %s3495_s20, %s3495_s20, %s3496_s21  }
  0x2c   : > { %p3049_p9 = scmp.ge.s32.totalorder %s3492_s9, 1  ;;  %p107_p1 = scmp.lt.s32.totalorder %s3492_s9, 3 }
  0x2e   : > { %p108_p3 = pnand %p3049_p9, %p107_p1 }
  0x2f   : > { %s3610_s22 = sand.u32 (!%p108_p3), 1, %s3484_s7  }
  0x30   : > { %111 = sbr.rel (%p108_p3) target bundleno = 1432 (0x598), region = 24  ;;  %s114_s26 = scalar_lea.sflag (!%p108_p3), [#allocation3], %s3610_s22 }
  0x31   : > { %s3271_s23 = smul.u32 (!%p108_p3), 96, %s3610_s22 }
  0x33   : > { %s3616_s29 = scalar_lea.vmem (!%p108_p3), [#allocation2], %s3271_s23 }
  0x37   : > { %3471 = dma.done.wait (%p3551_p6), %s114_s26, 1536  }
  0x38   : > { %3473 = vsyncadd (%p3551_p6), %s114_s26, 4294965760  ;;  %v3497_v0 = vmov 0.0   ;;  %vm3498_vm0 = vmmov 0   ;;  %vm243_vm1 = vcmask 1041409   ;;  %vm246_vm2 = vcmask 1042434   ;;  %s4233_s16 = scalar_lea.vmem [#allocation5], %s3271_s23 }
  0x39   : > { %3150 = vmatprep.subr.mxu0 %v3497_v0  ;;  %3155 = vmatprep.subr.mxu1 %v3497_v0  ;;  %vm249_vm3 = vcmask 1043459   ;;  %vm252_vm4 = vcmask 1044484   ;;  %vm255_vm5 = vcmask 1045509   ;;  %v138_v1 = vld [vmem:[%s3616_s29] sm:$0x1]  ;;  %vm258_vm6 = vcmask 1046534  }
  0x3a   : > { %3152 = vmatprep.mubr.msk.f32.mxu0 %vm3498_vm0, %v3497_v0  ;;  %3157 = vmatprep.mubr.msk.f32.mxu1 %vm3498_vm0, %v3497_v0  ;;  %v139_v2 = vld [vmem:[%s3616_s29 + $0x2] sm:$0x1]  ;;  %v140_v3 = vld [vmem:[%s3616_s29 + $0x4] sm:$0x1]  ;;  %v141_v4 = vld [vmem:[%s3616_s29 + $0x6] sm:$0x1] }
  0x3b   : > { %v142_v5 = vld [vmem:[%s3616_s29 + $0x8] sm:$0x1]  ;;  %v143_v6 = vld [vmem:[%s3616_s29 + $0xa] sm:$0x1]  ;;  %vm261_vm7 = vcmask 1047559   ;;  %v186_v9 = vmul.f32 0.015625, %v138_v1 }
  0x3c   : > { %v144_v7 = vld [vmem:[%s3616_s29 + $0xc] sm:$0x1]  ;;  %v145_v8 = vld [vmem:[%s3616_s29 + $0xe] sm:$0x1]  ;;  %v187_v10 = vmul.f32 0.015625, %v139_v2  ;;  %vm285_vm8 = vcmask 523264  }
  0x3d   : > { %v188_v11 = vmul.f32 0.015625, %v140_v3  ;;  %v189_v12 = vmul.f32 0.015625, %v141_v4  ;;  %v190_v13 = vmul.f32 0.015625, %v142_v5  ;;  %v191_v14 = vmul.f32 0.015625, %v143_v6  ;;  %v146_v19 = vld [vmem:[%s3616_s29 + $0x10] sm:$0x1] }
  0x3e   : > { %v192_v15 = vmul.f32 0.015625, %v144_v7  ;;  %v193_v16 = vmul.f32 0.015625, %v145_v8  ;;  %v271_v17 = vrot.slane %v139_v2, 7  ;;  %v273_v18 = vrot.slane %v140_v3, 6  ;;  %v147_v24 = vld [vmem:[%s3616_s29 + $0x12] sm:$0x1] }
  0x3f   : > { %v275_v20 = vrot.slane %v141_v4, 5  ;;  %v277_v21 = vrot.slane %v142_v5, 4  ;;  %v279_v22 = vrot.slane %v143_v6, 3  ;;  %v281_v23 = vrot.slane %v144_v7, 2  ;;  %v148_v29 = vld [vmem:[%s3616_s29 + $0x14] sm:$0x1] }
  0x40   : > { %v272_v25 = vsel %vm243_vm1, %v271_v17, %v138_v1  ;;  %v283_v26 = vrot.slane %v145_v8, 1  ;;  %v242_v27 = vrot.slane %v187_v10, 7  ;;  %v245_v28 = vrot.slane %v188_v11, 6  ;;  %v149_v34 = vld [vmem:[%s3616_s29 + $0x16] sm:$0x1]  ;;  %s3101_s24 = smul.u32 1536, %s3533_s10 }
  0x41   : > { %v274_v30 = vsel %vm246_vm2, %v273_v18, %v272_v25  ;;  %v248_v31 = vrot.slane %v189_v12, 5  ;;  %v251_v32 = vrot.slane %v190_v13, 4  ;;  %v254_v33 = vrot.slane %v191_v14, 3  ;;  %v150_v39 = vld [vmem:[%s3616_s29 + $0x18] sm:$0x1]  ;;  %s2971_s25 = sshll.u32 %s4233_s16, 4  ;;  %s4333_s25 = int_to_ptr.vmem [resolvable:$true] %s2971_s25 }
  0x42   : > { %v276_v35 = vsel %vm249_vm3, %v275_v20, %v274_v30  ;;  %v244_v36 = vsel %vm243_vm1, %v242_v27, %v186_v9  ;;  %v257_v37 = vrot.slane %v192_v15, 2  ;;  %v260_v38 = vrot.slane %v193_v16, 1  ;;  %v151_v40 = vld [vmem:[%s3616_s29 + $0x1a] sm:$0x1]  ;;  %v152_v43 = vld [vmem:[%s3616_s29 + $0x1c] sm:$0x1]  ;;  %s4331_s30 = scalar_lea.hbm %s4380_s1, %s3101_s24 }
  0x43   : > { %v278_v41 = vsel %vm252_vm4, %v277_v21, %v276_v35  ;;  %v247_v42 = vsel %vm246_vm2, %v245_v28, %v244_v36  ;;  %v153_v44 = vld [vmem:[%s3616_s29 + $0x1e] sm:$0x1]  ;;  %v194_v45 = vmul.f32 0.015625, %v146_v19  ;;  %v195_v46 = vmul.f32 0.015625, %v147_v24  ;;  %v154_v51 = vld [vmem:[%s3616_s29 + $0x20] sm:$0x1] }
  0x44   : > { %v280_v47 = vsel %vm255_vm5, %v279_v22, %v278_v41  ;;  %v250_v48 = vsel %vm249_vm3, %v248_v31, %v247_v42  ;;  %v196_v49 = vmul.f32 0.015625, %v148_v29  ;;  %v197_v50 = vmul.f32 0.015625, %v149_v34  ;;  %v155_v56 = vld [vmem:[%s3616_s29 + $0x22] sm:$0x1]  ;;  %v156_v57 = vld [vmem:[%s3616_s29 + $0x24] sm:$0x1] }
  0x45   : > { %v282_v52 = vsel %vm258_vm6, %v281_v23, %v280_v47  ;;  %v253_v53 = vsel %vm252_vm4, %v251_v32, %v250_v48  ;;  %v198_v54 = vmul.f32 0.015625, %v150_v39  ;;  %v3655_v55 = vmul.f32 0.015625, %v151_v40  ;;  %v157_v62 = vld [vmem:[%s3616_s29 + $0x26] sm:$0x1]  ;;  %v158_v63 = vld [vmem:[%s3616_s29 + $0x28] sm:$0x1] }
  0x46   : > { %v3660_v58 = vsel %vm261_vm7, %v283_v26, %v282_v52  ;;  %v256_v59 = vsel %vm255_vm5, %v254_v33, %v253_v53  ;;  %v3663_v60 = vmul.f32 0.015625, %v152_v43  ;;  %v3665_v61 = vmul.f32 0.015625, %v153_v44  ;;  %v159_v5 = vld [vmem:[%s3616_s29 + $0x2a] sm:$0x1]  ;;  %v160_v10 = vld [vmem:[%s3616_s29 + $0x2c] sm:$0x1] }
  0x47   : > { %3151 = vmatpush3.xpose.msk.msra.mxu0 %vm285_vm8, %v3660_v58  ;;  %v259_v1 = vsel %vm258_vm6, %v257_v37, %v256_v59  ;;  %v390_v2 = vrot.slane %v147_v24, 7  ;;  %v392_v3 = vrot.slane %v148_v29, 6  ;;  %v394_v4 = vrot.slane %v149_v34, 5  ;;  %v161_v13 = vld [vmem:[%s3616_s29 + $0x2e] sm:$0x1]  ;;  %s2957_s10 = scalar_lea.sflag [#allocation4], %s3610_s22 }
  0x48   : > { %v3674_v6 = vsel %vm261_vm7, %v260_v38, %v259_v1  ;;  %v396_v7 = vrot.slane %v150_v39, 4  ;;  %v398_v8 = vrot.slane %v151_v40, 3  ;;  %v400_v9 = vrot.slane %v152_v43, 2  ;;  %3160 = vmatprep.subr.mxu0 %v3497_v0  ;;  %v162_v48 = vld [vmem:[%s3616_s29 + $0x30] sm:$0x1]  ;;  %s3426_s2 = scalar_lea.vmem %s4333_s25, 1536 }
  0x49   : > { %v391_v11 = vsel %vm243_vm1, %v390_v2, %v146_v19  ;;  %v402_v12 = vrot.slane %v153_v44, 1  ;;  %v202_v14 = vmul.f32 0.015625, %v154_v51  ;;  %v508_v15 = vrot.slane %v155_v56, 7  ;;  %v166_v59 = vld [vmem:[%s3616_s29 + $0x38] sm:$0x1]  ;;  %p3427_p6 = scmp.ne.s32.totalorder %s4333_s25, %s3426_s2  ;;  %p4386_p11 = scmp.ne.s32.totalorder %s4383_s17, 0 }
  0x4a   : > { %3153 = vmatmul.mubr.msk.f32.vlgmr.msra.gmra.mrb[0].mxu0 %vm285_vm8, %v3674_v6  ;;  %v393_v16 = vsel %vm246_vm2, %v392_v3, %v391_v11  ;;  %v510_v17 = vrot.slane %v156_v57, 6  ;;  %v512_v18 = vrot.slane %v157_v62, 5  ;;  %v514_v20 = vrot.slane %v158_v63, 4  ;;  %v167_v1 = vld [vmem:[%s3616_s29 + $0x3a] sm:$0x1]  ;;  %s3499_s3 = smov [#allocation5]  }
  0x4b   : > { %v395_v21 = vsel %vm249_vm3, %v394_v4, %v393_v16  ;;  %v509_v22 = vsel %vm243_vm1, %v508_v15, %v154_v51  ;;  %v516_v23 = vrot.slane %v159_v5, 3  ;;  %v518_v24 = vrot.slane %v160_v10, 2  ;;  %3162 = vmatprep.mubr.msk.f32.mxu0 %vm3498_vm0, %v3497_v0  ;;  %p3428_p12 = pnand %p3427_p6, %p4386_p11  ;;  %s3430_s4 = sshll.u32 %s3499_s3, 4  ;;  %s3431_s4 = int_to_ptr.vmem [resolvable:$false] %s3430_s4 }
  0x4c   : > { %v397_v19 = vsel %vm252_vm4, %v396_v7, %v395_v21  ;;  %v511_v25 = vsel %vm246_vm2, %v510_v17, %v509_v22  ;;  %v520_v26 = vrot.slane %v161_v13, 1  ;;  %v368_v27 = vrot.slane %v195_v46, 7  ;;  %s3432_s5 = scalar_lea.vmem %s3431_s4, 3072  ;;  %p3433_p8 = scmp.lt.s32.totalorder %s4333_s25, %s3431_s4 }
  0x4d   : > { %v399_v28 = vsel %vm255_vm5, %v398_v8, %v397_v19  ;;  %v513_v29 = vsel %vm249_vm3, %v512_v18, %v511_v25  ;;  %v370_v30 = vrot.slane %v196_v49, 6  ;;  %v372_v31 = vrot.slane %v197_v50, 5  ;;  %v163_v49 = vld [vmem:[%s3616_s29 + $0x32] sm:$0x1]  ;;  %v164_v50 = vld [vmem:[%s3616_s29 + $0x34] sm:$0x1]  ;;  %p3429_p13 = pneg %p3428_p12  ;;  %p3434_p10 = scmp.lt.s32.totalorder %s3432_s5, %s3426_s2 }
  0x4e   : > { %v401_v32 = vsel %vm258_vm6, %v400_v9, %v399_v28  ;;  %v515_v33 = vsel %vm252_vm4, %v514_v20, %v513_v29  ;;  %v369_v34 = vsel %vm243_vm1, %v368_v27, %v194_v45  ;;  %v374_v35 = vrot.slane %v198_v54, 4 }
  0x4f   : > { %v3695_v36 = vsel %vm261_vm7, %v402_v12, %v401_v32  ;;  %v517_v37 = vsel %vm255_vm5, %v516_v23, %v515_v33  ;;  %v371_v38 = vsel %vm246_vm2, %v370_v30, %v369_v34  ;;  %v376_v39 = vrot.slane %v3655_v55, 3  ;;  %v165_v55 = vld [vmem:[%s3616_s29 + $0x36] sm:$0x1]  ;;  %v171_v32 = vld [vmem:[%s3616_s29 + $0x42] sm:$0x1]  ;;  %p3435_p0 = por %p3434_p10, %p3433_p8 }
  0x50   : > { %3156 = vmatpush3.xpose.msk.msra.mxu1 %vm285_vm8, %v3695_v36  ;;  %v519_v40 = vsel %vm258_vm6, %v518_v24, %v517_v37  ;;  %v373_v41 = vsel %vm249_vm3, %v372_v31, %v371_v38  ;;  %v378_v42 = vrot.slane %v3663_v60, 2  ;;  %v380_v43 = vrot.slane %v3665_v61, 1  ;;  %v170_v31 = vld [vmem:[%s3616_s29 + $0x40] sm:$0x1]  ;;  %v172_v38 = vld [vmem:[%s3616_s29 + $0x44] sm:$0x1] }
  0x51   : > { %v3707_v44 = vsel %vm261_vm7, %v520_v26, %v519_v40  ;;  %v375_v45 = vsel %vm252_vm4, %v374_v35, %v373_v41  ;;  %3165 = vmatprep.subr.mxu1 %v3497_v0  ;;  %v203_v46 = vmul.f32 0.015625, %v155_v56  ;;  %v204_v47 = vmul.f32 0.015625, %v156_v57  ;;  %p3436_p2 = pnand %p3435_p0, %p3429_p13 }
  0x52   : > { %3161 = vmatpush3.xpose.msk.msra.mxu0 %vm285_vm8, %v3707_v44  ;;  %v377_v51 = vsel %vm255_vm5, %v376_v39, %v375_v45  ;;  %v205_v52 = vmul.f32 0.015625, %v157_v62  ;;  %v206_v53 = vmul.f32 0.015625, %v158_v63  ;;  %v207_v54 = vmul.f32 0.015625, %v159_v5  ;;  %v168_v62 = vld [vmem:[%s3616_s29 + $0x3c] sm:$0x1] }
  0x53   : > { %v379_v60 = vsel %vm258_vm6, %v378_v42, %v377_v51  ;;  %v208_v56 = vmul.f32 0.015625, %v160_v10  ;;  %v209_v61 = vmul.f32 0.015625, %v161_v13  ;;  %v486_v57 = vrot.slane %v203_v46, 7  ;;  %3170 = vmatprep.subr.mxu0 %v3497_v0  ;;  %v169_v10 = vld [vmem:[%s3616_s29 + $0x3e] sm:$0x1] }
  0x54   : > { %v3723_v2 = vsel %vm261_vm7, %v380_v43, %v379_v60  ;;  %v488_v3 = vrot.slane %v204_v47, 6  ;;  %v490_v4 = vrot.slane %v205_v52, 5  ;;  %v492_v7 = vrot.slane %v206_v53, 4  ;;  %v173_v39 = vld [vmem:[%s3616_s29 + $0x46] sm:$0x1] }
  0x55   : > { %3158 = vmatmul.mubr.msk.f32.vlgmr.msra.gmra.mrb[0].mxu1 %vm285_vm8, %v3723_v2  ;;  %v487_v63 = vsel %vm243_vm1, %v486_v57, %v202_v14  ;;  %v494_v5 = vrot.slane %v207_v54, 3  ;;  %v496_v8 = vrot.slane %v208_v56, 2  ;;  %v498_v9 = vrot.slane %v209_v61, 1  ;;  %v174_v45 = vld [vmem:[%s3616_s29 + $0x48] sm:$0x1] }
  0x56   : > { %v489_v11 = vsel %vm246_vm2, %v488_v3, %v487_v63  ;;  %v210_v12 = vmul.f32 0.015625, %v162_v48  ;;  %v626_v13 = vrot.slane %v163_v49, 7  ;;  %v628_v15 = vrot.slane %v164_v50, 6  ;;  %3167 = vmatprep.mubr.msk.f32.mxu1 %vm3498_vm0, %v3497_v0 }
  0x57   : > { %v491_v16 = vsel %vm249_vm3, %v490_v4, %v489_v11  ;;  %v630_v17 = vrot.slane %v165_v55, 5  ;;  %v632_v18 = vrot.slane %v166_v59, 4  ;;  %v634_v20 = vrot.slane %v167_v1, 3 }
  0x58   : > { %v493_v14 = vsel %vm252_vm4, %v492_v7, %v491_v16  ;;  %v627_v21 = vsel %vm243_vm1, %v626_v13, %v162_v48  ;;  %v636_v22 = vrot.slane %v168_v62, 2  ;;  %v638_v23 = vrot.slane %v169_v10, 1 }
  0x59   : > { %v495_v24 = vsel %vm255_vm5, %v494_v5, %v493_v14  ;;  %v629_v19 = vsel %vm246_vm2, %v628_v15, %v627_v21  ;;  %v211_v25 = vmul.f32 0.015625, %v163_v49  ;;  %v212_v26 = vmul.f32 0.015625, %v164_v50  ;;  %v175_v50 = vld [vmem:[%s3616_s29 + $0x4a] sm:$0x1] }
  0x5a   : > { %v497_v27 = vsel %vm258_vm6, %v496_v8, %v495_v24  ;;  %v631_v28 = vsel %vm249_vm3, %v630_v17, %v629_v19  ;;  %v213_v29 = vmul.f32 0.015625, %v165_v55  ;;  %v214_v30 = vmul.f32 0.015625, %v166_v59  ;;  %v176_v55 = vld [vmem:[%s3616_s29 + $0x4c] sm:$0x1]  ;;  %v177_v59 = vld [vmem:[%s3616_s29 + $0x4e] sm:$0x1] }
  0x5b   : > { %v3743_v33 = vsel %vm261_vm7, %v498_v9, %v497_v27  ;;  %v633_v34 = vsel %vm252_vm4, %v632_v18, %v631_v28  ;;  %v215_v35 = vmul.f32 0.015625, %v167_v1  ;;  %v216_v37 = vmul.f32 0.015625, %v168_v62  ;;  %v178_v18 = vld [vmem:[%s3616_s29 + $0x50] sm:$0x1]  ;;  %v180_v24 = vld [vmem:[%s3616_s29 + $0x54] sm:$0x1] }
  0x5c   : > { %3163 = vmatmul.mubr.msk.f32.vlgmr.msra.gmra.mrb[2].mxu0 %vm285_vm8, %v3743_v33  ;;  %v635_v40 = vsel %vm255_vm5, %v634_v20, %v633_v34  ;;  %v217_v41 = vmul.f32 0.015625, %v169_v10  ;;  %v604_v42 = vrot.slane %v211_v25, 7  ;;  %v606_v43 = vrot.slane %v212_v26, 6  ;;  %v179_v20 = vld [vmem:[%s3616_s29 + $0x52] sm:$0x1] }
  0x5d   : > { %v637_v46 = vsel %vm258_vm6, %v636_v22, %v635_v40  ;;  %v608_v47 = vrot.slane %v213_v29, 5  ;;  %v610_v48 = vrot.slane %v214_v30, 4  ;;  %v612_v49 = vrot.slane %v215_v35, 3  ;;  %3172 = vmatprep.mubr.msk.f32.mxu0 %vm3498_vm0, %v3497_v0  ;;  %v181_v19 = vld [vmem:[%s3616_s29 + $0x56] sm:$0x1] }
  0x5e   : > { %v3757_v51 = vsel %vm261_vm7, %v638_v23, %v637_v46  ;;  %v605_v52 = vsel %vm243_vm1, %v604_v42, %v210_v12  ;;  %v614_v53 = vrot.slane %v216_v37, 2  ;;  %v616_v54 = vrot.slane %v217_v41, 1  ;;  %v182_v29 = vld [vmem:[%s3616_s29 + $0x58] sm:$0x1]  ;;  %v183_v35 = vld [vmem:[%s3616_s29 + $0x5a] sm:$0x1] }
  0x5f   : > { %3166 = vmatpush3.xpose.msk.msra.mxu1 %vm285_vm8, %v3757_v51  ;;  %v607_v60 = vsel %vm246_vm2, %v606_v43, %v605_v52  ;;  %v218_v56 = vmul.f32 0.015625, %v170_v31  ;;  %v744_v61 = vrot.slane %v171_v32, 7  ;;  %v746_v57 = vrot.slane %v172_v38, 6  ;;  %v184_v41 = vld [vmem:[%s3616_s29 + $0x5c] sm:$0x1] }
  0x60   : > { %v609_v1 = vsel %vm249_vm3, %v608_v47, %v607_v60  ;;  %v748_v3 = vrot.slane %v173_v39, 5  ;;  %v750_v4 = vrot.slane %v174_v45, 4  ;;  %v752_v7 = vrot.slane %v175_v50, 3  ;;  %3175 = vmatprep.subr.mxu1 %v3497_v0  ;;  %v185_v42 = vld [vmem:[%s3616_s29 + $0x5e] sm:$0x1] }
  0x61   : > { %v611_v62 = vsel %vm252_vm4, %v610_v48, %v609_v1  ;;  %v745_v63 = vsel %vm243_vm1, %v744_v61, %v170_v31  ;;  %v754_v5 = vrot.slane %v176_v55, 2  ;;  %v756_v8 = vrot.slane %v177_v59, 1 }
  0x62   : > { %v613_v9 = vsel %vm255_vm5, %v612_v49, %v611_v62  ;;  %v747_v10 = vsel %vm246_vm2, %v746_v57, %v745_v63  ;;  %v219_v11 = vmul.f32 0.015625, %v171_v32  ;;  %v220_v12 = vmul.f32 0.015625, %v172_v38 }
  0x63   : > { %v615_v13 = vsel %vm258_vm6, %v614_v53, %v613_v9  ;;  %v749_v15 = vsel %vm249_vm3, %v748_v3, %v747_v10  ;;  %v221_v16 = vmul.f32 0.015625, %v173_v39  ;;  %v222_v17 = vmul.f32 0.015625, %v174_v45 }
  0x64   : > { %v3776_v14 = vsel %vm261_vm7, %v616_v54, %v615_v13  ;;  %v751_v21 = vsel %vm252_vm4, %v750_v4, %v749_v15  ;;  %v223_v22 = vmul.f32 0.015625, %v175_v50  ;;  %v224_v23 = vmul.f32 0.015625, %v176_v55 }
  0x65   : > { %3168 = vmatmul.mubr.msk.f32.vlgmr.msra.gmra.mrb[2].mxu1 %vm285_vm8, %v3776_v14  ;;  %v753_v25 = vsel %vm255_vm5, %v752_v7, %v751_v21  ;;  %v225_v26 = vmul.f32 0.015625, %v177_v59  ;;  %v722_v27 = vrot.slane %v219_v11, 7  ;;  %v724_v28 = vrot.slane %v220_v12, 6 }
  0x66   : > { %v755_v30 = vsel %vm258_vm6, %v754_v5, %v753_v25  ;;  %v726_v31 = vrot.slane %v221_v16, 5  ;;  %v728_v32 = vrot.slane %v222_v17, 4  ;;  %v730_v34 = vrot.slane %v223_v22, 3  ;;  %3177 = vmatprep.mubr.msk.f32.mxu1 %vm3498_vm0, %v3497_v0 }
  0x67   : > { %v3790_v37 = vsel %vm261_vm7, %v756_v8, %v755_v30  ;;  %v723_v38 = vsel %vm243_vm1, %v722_v27, %v218_v56  ;;  %v732_v39 = vrot.slane %v224_v23, 2  ;;  %v734_v40 = vrot.slane %v225_v26, 1 }
  0x68   : > { %3171 = vmatpush3.xpose.msk.msra.mxu0 %vm285_vm8, %v3790_v37  ;;  %v725_v43 = vsel %vm246_vm2, %v724_v28, %v723_v38  ;;  %v226_v45 = vmul.f32 0.015625, %v178_v18  ;;  %v862_v46 = vrot.slane %v179_v20, 7  ;;  %v864_v47 = vrot.slane %v180_v24, 6 }
  0x69   : > { %v727_v48 = vsel %vm249_vm3, %v726_v31, %v725_v43  ;;  %v866_v49 = vrot.slane %v181_v19, 5  ;;  %v868_v50 = vrot.slane %v182_v29, 4  ;;  %v870_v52 = vrot.slane %v183_v35, 3  ;;  %3180 = vmatprep.subr.mxu0 %v3497_v0 }
  0x6a   : > { %v729_v53 = vsel %vm252_vm4, %v728_v32, %v727_v48  ;;  %v863_v54 = vsel %vm243_vm1, %v862_v46, %v178_v18  ;;  %v872_v55 = vrot.slane %v184_v41, 2  ;;  %v874_v59 = vrot.slane %v185_v42, 1 }
  0x6b   : > { %v731_v60 = vsel %vm255_vm5, %v730_v34, %v729_v53  ;;  %v865_v56 = vsel %vm246_vm2, %v864_v47, %v863_v54  ;;  %v227_v61 = vmul.f32 0.015625, %v179_v20  ;;  %v228_v57 = vmul.f32 0.015625, %v180_v24 }
  0x6c   : > { %v733_v1 = vsel %vm258_vm6, %v732_v39, %v731_v60  ;;  %v867_v3 = vsel %vm249_vm3, %v866_v49, %v865_v56  ;;  %v229_v4 = vmul.f32 0.015625, %v181_v19  ;;  %v230_v7 = vmul.f32 0.015625, %v182_v29 }
  0x6d   : > { %v735_v62 = vsel %vm261_vm7, %v734_v40, %v733_v1  ;;  %v869_v63 = vsel %vm252_vm4, %v868_v50, %v867_v3  ;;  %v231_v5 = vmul.f32 0.015625, %v183_v35  ;;  %v232_v8 = vmul.f32 0.015625, %v184_v41 }
  0x6e   : > { %3173 = vmatmul.mubr.msk.f32.vlgmr.msra.gmra.mrb[4].mxu0 %vm285_vm8, %v735_v62  ;;  %v871_v9 = vsel %vm255_vm5, %v870_v52, %v869_v63  ;;  %v233_v10 = vmul.f32 0.015625, %v185_v42  ;;  %v840_v11 = vrot.slane %v227_v61, 7  ;;  %v842_v12 = vrot.slane %v228_v57, 6 }
  0x6f   : > { %v873_v13 = vsel %vm258_vm6, %v872_v55, %v871_v9  ;;  %v844_v15 = vrot.slane %v229_v4, 5  ;;  %v846_v16 = vrot.slane %v230_v7, 4  ;;  %3181 = vmatpush3.msra.mxu0 %v3660_v58  ;;  %3182 = vmatprep.mubr.msk.f32.mxu0 %vm3498_vm0, %v3497_v0  ;;  %v848_v20 = vrot.slane %v231_v5, 3 }
  0x70   : > { %v3815_v17 = vsel %vm261_vm7, %v874_v59, %v873_v13  ;;  %v841_v18 = vsel %vm243_vm1, %v840_v11, %v226_v45  ;;  %3190 = vmatprep.subr.mxu0 %v3497_v0  ;;  %v850_v22 = vrot.slane %v232_v8, 2  ;;  %v956_v58 = vsel %vm285_vm8, %v3674_v6, 0.0 }
  0x71   : > { %3176 = vmatpush3.xpose.msk.msra.mxu1 %vm285_vm8, %v3815_v17  ;;  %v843_v21 = vsel %vm246_vm2, %v842_v12, %v841_v18  ;;  %v965_v23 = vsel %vm285_vm8, %v3776_v14, 0.0  ;;  %v852_v19 = vrot.slane %v233_v10, 1  ;;  %957 = vadd.xlane.f32.xlu0 %v956_v58  ;;  %v959_v26 = vsel %vm285_vm8, %v3723_v2, 0.0 }
  0x72   : > { %v845_v24 = vsel %vm249_vm3, %v844_v15, %v843_v21  ;;  %966 = vadd.xlane.f32.xlu1 %v965_v23  ;;  %3185 = vmatprep.subr.mxu1 %v3497_v0  ;;  %v962_v2 = vsel %vm285_vm8, %v3743_v33, 0.0  ;;  %vm974_vm9 = vcmask 64512   ;;  %v968_v39 = vsel %vm285_vm8, %v735_v62, 0.0 }
  0x73   : > { %v847_v25 = vsel %vm252_vm4, %v846_v16, %v845_v24 }
  0x74   : > { %v849_v27 = vsel %vm255_vm5, %v848_v20, %v847_v25 }
  0x75   : > { %v851_v28 = vsel %vm258_vm6, %v850_v22, %v849_v27  ;;  %960 = vadd.xlane.f32.xlu0 %v959_v26 }
  0x76   : > { %v853_v6 = vsel %vm261_vm7, %v852_v19, %v851_v28 }
  0x77   : > { %3178 = vmatmul.mubr.msk.f32.vlgmr.msra.gmra.mrb[4].mxu1 %vm285_vm8, %v853_v6  ;;  %v971_v42 = vsel %vm285_vm8, %v853_v6, 0.0 }
  0x78   : > { %3186 = vmatpush3.msra.mxu1 %v3695_v36  ;;  %3187 = vmatprep.mubr.msk.f32.mxu1 %vm3498_vm0, %v3497_v0 }
  0x79   : > { %3195 = vmatprep.subr.mxu1 %v3497_v0  ;;  %963 = vadd.xlane.f32.xlu0 %v962_v2 }
  0xfe   : > { %v958_v52 = vpop.xlane.xlu0 %957 }
  0xff   : > { %v3849_v50 = vpop.xlane.xlu1 %966 }
 0x102   : > { %v961_v60 = vpop.xlane.xlu0 %960 }
 0x106   : > { %v964_v61 = vpop.xlane.xlu0 %963 }
 0x11d   : > { %v356_v14 = vpop.f32.mrb[0].mxu0 }
 0x11e   : > { %v3154_v29 = vpop.f32.mrb[1].mxu0  ;;  %v975_v30 = vsel %vm974_vm9, %v356_v14, -inf }
 0x11f   : > { %976 = vmax.xlane.f32.xlu1 %v975_v30 }
 0x128   : > { %v474_v31 = vpop.f32.mrb[0].mxu1 }
 0x129   : > { %v3159_v32 = vpop.f32.mrb[1].mxu1  ;;  %v978_v34 = vsel %vm974_vm9, %v474_v31, -inf }
 0x12a   : > { %979 = vmax.xlane.f32.xlu1 %v978_v34 }
 0x12f   : > { %v592_v36 = vpop.f32.mrb[2].mxu0 }
 0x130   : > { %v981_v35 = vsel %vm974_vm9, %v592_v36, -inf  ;;  %v3164_v38 = vpop.f32.mrb[3].mxu0 }
 0x131   : > { %982 = vmax.xlane.f32.xlu0 %v981_v35 }
 0x135   : > { %969 = vadd.xlane.f32.xlu0 %v968_v39 }
 0x138   : > { %v710_v33 = vpop.f32.mrb[2].mxu1 }
 0x139   : > { %v3169_v40 = vpop.f32.mrb[3].mxu1  ;;  %v984_v41 = vsel %vm974_vm9, %v710_v33, -inf }
 0x13a   : > { %985 = vmax.xlane.f32.xlu1 %v984_v41 }
 0x13e   : > { %972 = vadd.xlane.f32.xlu1 %v971_v42 }
 0x141   : > { %v828_v43 = vpop.f32.mrb[4].mxu0 }
 0x142   : > { %v987_v45 = vsel %vm974_vm9, %v828_v43, -inf  ;;  %v3174_v46 = vpop.f32.mrb[5].mxu0 }
 0x143   : > { %988 = vmax.xlane.f32.xlu0 %v987_v45 }
 0x14a   : > { %v946_v47 = vpop.f32.mrb[4].mxu1 }
 0x14b   : > { %v3179_v48 = vpop.f32.mrb[5].mxu1  ;;  %v990_v49 = vsel %vm974_vm9, %v946_v47, -inf }
 0x14c   : > { %991 = vmax.xlane.f32.xlu1 %v990_v49 }
 0x1ac   : > { %v977_v53 = vpop.xlane.xlu1 %976 }
 0x1ad   : > { %v993_v54 = vmax.f32 %v977_v53, %v958_v52 }
 0x1af   : > { %v999_v55 = vsub.f32 %v356_v14, %v993_v54  ;;  %v1017_v35 = vsub.f32 %v958_v52, %v993_v54  ;;  %v1551_v52 = vld [vmem:[%s3616_s29 + $0x1] sm:$0x1] }
 0x1b1   : > { %v1005_v59 = vmul.f32 1.442695, %v999_v55  ;;  %v1023_v38 = vmul.f32 1.442695, %v1017_v35  ;;  %v1554_v55 = vld [vmem:[%s3616_s29 + $0x7] sm:$0x1] }
 0x1b3   : > { %3324 = vpow2.f32 %v1005_v59 }
 0x1b7   : > { %v980_v56 = vpop.xlane.xlu1 %979 }
 0x1b8   : > { %v994_v57 = vmax.f32 %v980_v56, %v961_v60  ;;  %v1599_v56 = vmul.f32 0.015625, %v1551_v52 }
 0x1ba   : > { %v1000_v1 = vsub.f32 %v474_v31, %v994_v57  ;;  %v1018_v39 = vsub.f32 %v961_v60, %v994_v57 }
 0x1bc   : > { %v1007_v3 = vmul.f32 1.442695, %v1000_v1  ;;  %v1555_v1 = vld [vmem:[%s3616_s29 + $0x9] sm:$0x1] }
 0x1bd   : > { %v3851_v4 = vpop.eup %3324 }
 0x1be   : > { %3326 = vpow2.f32 %v1007_v3  ;;  %v983_v7 = vpop.xlane.xlu0 %982  ;;  %v1035_v62 = vsel %vm974_vm9, %v3851_v4, 0.0  ;;  %v1681_v3 = vrot.slane %v1554_v55, 5 }
 0x1bf   : > { %v995_v63 = vmax.f32 %v983_v7, %v964_v61  ;;  %1036 = vadd.xlane.f32.xlu0 %v1035_v62  ;;  %v1602_v7 = vmul.f32 0.015625, %v1554_v55 }
 0x1c1   : > { %v1001_v5 = vsub.f32 %v592_v36, %v995_v63  ;;  %v1019_v8 = vsub.f32 %v964_v61, %v995_v63 }
 0x1c2   : > { %v970_v18 = vpop.xlane.xlu0 %969 }
 0x1c3   : > { %v1009_v9 = vmul.f32 1.442695, %v1001_v5  ;;  %v1027_v40 = vmul.f32 1.442695, %v1019_v8 }
 0x1c5   : > { %3328 = vpow2.f32 %v1009_v9  ;;  %v1560_v9 = vld [vmem:[%s3616_s29 + $0x13] sm:$0x1] }
 0x1c7   : > { %v986_v10 = vpop.xlane.xlu1 %985 }
 0x1c8   : > { %v3855_v11 = vpop.eup %3326  ;;  %v996_v12 = vmax.f32 %v986_v10, %v3849_v50 }
 0x1c9   : > { %v1038_v13 = vsel %vm974_vm9, %v3855_v11, 0.0 }
 0x1ca   : > { %v1002_v15 = vsub.f32 %v710_v33, %v996_v12  ;;  %v1020_v16 = vsub.f32 %v3849_v50, %v996_v12  ;;  %1039 = vadd.xlane.f32.xlu1 %v1038_v13  ;;  %v1025_v33 = vmul.f32 1.442695, %v1018_v39  ;;  %v1556_v12 = vld [vmem:[%s3616_s29 + $0xb] sm:$0x1]  ;;  %v1683_v13 = vrot.slane %v1555_v1, 4 }
 0x1cb   : > { %v973_v24 = vpop.xlane.xlu1 %972 }
 0x1cc   : > { %v1011_v20 = vmul.f32 1.442695, %v1002_v15  ;;  %v1029_v41 = vmul.f32 1.442695, %v1020_v16  ;;  %v1603_v15 = vmul.f32 0.015625, %v1555_v1 }
 0x1ce   : > { %3330 = vpow2.f32 %v1011_v20  ;;  %v1659_v20 = vrot.slane %v1602_v7, 5  ;;  %v1569_v7 = vld [vmem:[%s3616_s29 + $0x25] sm:$0x1] }
 0x1cf   : > { %v3861_v21 = vpop.eup %3328 }
 0x1d0   : > { %v989_v22 = vpop.xlane.xlu0 %988  ;;  %v1041_v58 = vsel %vm974_vm9, %v3861_v21, 0.0 }
 0x1d1   : > { %v997_v23 = vmax.f32 %v989_v22, %v970_v18  ;;  %1042 = vadd.xlane.f32.xlu0 %v1041_v58 }
 0x1d3   : > { %v1003_v19 = vsub.f32 %v828_v43, %v997_v23  ;;  %v1021_v25 = vsub.f32 %v970_v18, %v997_v23  ;;  %v1552_v43 = vld [vmem:[%s3616_s29 + $0x3] sm:$0x1]  ;;  %v1557_v23 = vld [vmem:[%s3616_s29 + $0xd] sm:$0x1] }
 0x1d4   : > { %v1677_v48 = vrot.slane %v1552_v43, 7  ;;  %v1600_v49 = vmul.f32 0.015625, %v1552_v43 }
 0x1d5   : > { %v1013_v26 = vmul.f32 1.442695, %v1003_v19  ;;  %v1031_v42 = vmul.f32 1.442695, %v1021_v25  ;;  %v1561_v19 = vld [vmem:[%s3616_s29 + $0x15] sm:$0x1] }
 0x1d6   : > { %v1678_v61 = vsel %vm243_vm1, %v1677_v48, %v1551_v52  ;;  %v1655_v57 = vrot.slane %v1600_v49, 7  ;;  %v1795_v25 = vrot.slane %v1560_v9, 7 }
 0x1d7   : > { %3332 = vpow2.f32 %v1013_v26  ;;  %v3897_v26 = vld [vmem:[%s3616_s29 + $0xf] sm:$0x1] }
 0x1d8   : > { %v3865_v27 = vpop.eup %3330  ;;  %v1656_v8 = vsel %vm243_vm1, %v1655_v57, %v1599_v56  ;;  %v1689_v1 = vrot.slane %v3897_v26, 1 }
 0x1d9   : > { %v992_v28 = vpop.xlane.xlu1 %991  ;;  %v1044_v6 = vsel %vm974_vm9, %v3865_v27, 0.0 }
 0x1da   : > { %v998_v2 = vmax.f32 %v992_v28, %v973_v24  ;;  %1045 = vadd.xlane.f32.xlu1 %v1044_v6  ;;  %v1685_v28 = vrot.slane %v1556_v12, 3  ;;  %v1604_v6 = vmul.f32 0.015625, %v1556_v12 }
 0x1dc   : > { %v1004_v14 = vsub.f32 %v946_v47, %v998_v2  ;;  %v1022_v29 = vsub.f32 %v973_v24, %v998_v2  ;;  %v1553_v47 = vld [vmem:[%s3616_s29 + $0x5] sm:$0x1]  ;;  %v1559_v2 = vld [vmem:[%s3616_s29 + $0x11] sm:$0x1] }
 0x1dd   : > { %v1679_v59 = vrot.slane %v1553_v47, 6  ;;  %v1601_v60 = vmul.f32 0.015625, %v1553_v47  ;;  %v1606_v47 = vmul.f32 0.015625, %v3897_v26  ;;  %v1796_v48 = vsel %vm243_vm1, %v1795_v25, %v1559_v2 }
 0x1de   : > { %v1015_v30 = vmul.f32 1.442695, %v1004_v14  ;;  %v1033_v46 = vmul.f32 1.442695, %v1022_v29  ;;  %v1915_v26 = vrot.slane %v1569_v7, 6 }
 0x1df   : > { %v1680_v62 = vsel %vm246_vm2, %v1679_v59, %v1678_v61  ;;  %v1657_v63 = vrot.slane %v1601_v60, 6  ;;  %v1563_v60 = vld [vmem:[%s3616_s29 + $0x19] sm:$0x1] }
 0x1e0   : > { %3334 = vpow2.f32 %v1015_v30  ;;  %v1682_v18 = vsel %vm249_vm3, %v1681_v3, %v1680_v62 }
 0x1e1   : > { %v3869_v31 = vpop.eup %3332  ;;  %3336 = vpow2.f32 %v1023_v38  ;;  %v1658_v24 = vsel %vm246_vm2, %v1657_v63, %v1656_v8  ;;  %v1608_v8 = vmul.f32 0.015625, %v1560_v9 }
 0x1e2   : > { %v1047_v32 = vsel %vm974_vm9, %v3869_v31, 0.0  ;;  %3338 = vpow2.f32 %v1025_v33  ;;  %v1660_v33 = vsel %vm249_vm3, %v1659_v20, %v1658_v24  ;;  %v1570_v24 = vld [vmem:[%s3616_s29 + $0x27] sm:$0x1] }
 0x1e3   : > { %1048 = vadd.xlane.f32.xlu0 %v1047_v32  ;;  %3340 = vpow2.f32 %v1027_v40  ;;  %v1684_v32 = vsel %vm252_vm4, %v1683_v13, %v1682_v18  ;;  %v1562_v40 = vld [vmem:[%s3616_s29 + $0x17] sm:$0x1]  ;;  %v1801_v18 = vrot.slane %v1563_v60, 4 }
 0x1e4   : > { %3342 = vpow2.f32 %v1029_v41  ;;  %v1797_v41 = vrot.slane %v1561_v19, 6  ;;  %v1686_v52 = vsel %vm255_vm5, %v1685_v28, %v1684_v32  ;;  %v1799_v56 = vrot.slane %v1562_v40, 5  ;;  %v3937_v28 = vld [vmem:[%s3616_s29 + $0x1f] sm:$0x1] }
 0x1e5   : > { %3344 = vpow2.f32 %v1031_v42  ;;  %v1568_v42 = vld [vmem:[%s3616_s29 + $0x23] sm:$0x1] }
 0x1e6   : > { %3346 = vpow2.f32 %v1033_v46  ;;  %v1605_v46 = vmul.f32 0.015625, %v1557_v23  ;;  %v1913_v61 = vrot.slane %v1568_v42, 7  ;;  %v1798_v3 = vsel %vm246_vm2, %v1797_v41, %v1796_v48  ;;  %v1571_v41 = vld [vmem:[%s3616_s29 + $0x29] sm:$0x1] }
 0x1e8   : > { %v1665_v63 = vrot.slane %v1605_v46, 2  ;;  %v1610_v46 = vmul.f32 0.015625, %v1562_v40 }
 0x1ea   : > { %v3873_v34 = vpop.eup %3334 }
 0x1eb   : > { %v1050_v36 = vsel %vm974_vm9, %v3873_v34, 0.0  ;;  %v3337_v45 = vpop.eup %3336 }
 0x1ec   : > { %1051 = vadd.xlane.f32.xlu1 %v1050_v36  ;;  %v3879_v50 = vmul.f32 15.0, %v3337_v45  ;;  %v3339_v5 = vpop.eup %3338  ;;  %v1661_v36 = vrot.slane %v1603_v15, 4  ;;  %v1687_v45 = vrot.slane %v1557_v23, 2  ;;  %v1564_v15 = vld [vmem:[%s3616_s29 + $0x1b] sm:$0x1]  ;;  %v1800_v23 = vsel %vm249_vm3, %v1799_v56, %v1798_v3 }
 0x1ed   : > { %v3341_v10 = vpop.eup %3340  ;;  %v3891_v58 = vmul.f32 15.0, %v3339_v5  ;;  %v1667_v5 = vrot.slane %v1606_v47, 1  ;;  %v1617_v47 = vmul.f32 0.015625, %v1569_v7  ;;  %v1611_v7 = vmul.f32 0.015625, %v1563_v60 }
 0x1ee   : > { %v3343_v16 = vpop.eup %3342  ;;  %v3900_v29 = vmul.f32 15.0, %v3341_v10  ;;  %v1662_v59 = vsel %vm252_vm4, %v1661_v36, %v1660_v33  ;;  %v1688_v62 = vsel %vm258_vm6, %v1687_v45, %v1686_v52  ;;  %v1803_v36 = vrot.slane %v1564_v15, 3  ;;  %v1573_v52 = vld [vmem:[%s3616_s29 + $0x2d] sm:$0x1] }
 0x1ef   : > { %v3345_v22 = vpop.eup %3344  ;;  %v3902_v30 = vmul.f32 15.0, %v3343_v16  ;;  %v1607_v16 = vmul.f32 0.015625, %v1559_v2  ;;  %v3946_v33 = vsel %vm261_vm7, %v1689_v1, %v1688_v62  ;;  %v1618_v62 = vmul.f32 0.015625, %v1570_v24 }
 0x1f0   : > { %v3347_v35 = vpop.eup %3346  ;;  %v3908_v39 = vmul.f32 15.0, %v3345_v22  ;;  %v1565_v22 = vld [vmem:[%s3616_s29 + $0x1d] sm:$0x1] }
 0x1f1   : > { %v3917_v55 = vmul.f32 15.0, %v3347_v35  ;;  %v1773_v35 = vrot.slane %v1608_v8, 7  ;;  %v1923_v8 = vrot.slane %v1573_v52, 2 }
 0x1f3   : > { %v1774_v1 = vsel %vm243_vm1, %v1773_v35, %v1607_v16 }
 0x24c   : > { %v1037_v53 = vpop.xlane.xlu0 %1036 }
 0x24d   : > { %v1059_v54 = vadd.f32 %v3879_v50, %v1037_v53  ;;  %v1663_v53 = vrot.slane %v1604_v6, 3  ;;  %v1609_v6 = vmul.f32 0.015625, %v1561_v19  ;;  %v1805_v19 = vrot.slane %v1565_v22, 2 }
 0x24f   : > { %3348 = vrcp.f32 %v1059_v54  ;;  %v1664_v13 = vsel %vm255_vm5, %v1663_v53, %v1662_v59  ;;  %v1775_v59 = vrot.slane %v1609_v6, 6  ;;  %v1895_v6 = vrot.slane %v1618_v62, 5 }
 0x250   : > { %v1666_v32 = vsel %vm258_vm6, %v1665_v63, %v1664_v13 }
 0x251   : > { %v1776_v13 = vsel %vm246_vm2, %v1775_v59, %v1774_v1  ;;  %v1575_v59 = vld [vmem:[%s3616_s29 + $0x31] sm:$0x1] }
 0x257   : > { %v1040_v14 = vpop.xlane.xlu1 %1039 }
 0x258   : > { %v3906_v38 = vadd.f32 %v3891_v58, %v1040_v14  ;;  %v1616_v14 = vmul.f32 0.015625, %v1568_v42  ;;  %v1917_v42 = vrot.slane %v1570_v24, 5  ;;  %v1612_v24 = vmul.f32 0.015625, %v1564_v15 }
 0x259   : > { %v3349_v43 = vpop.eup %3348 }
 0x25a   : > { %v1071_v49 = vmul.f32 %v3349_v43, %v1059_v54  ;;  %3350 = vrcp.f32 %v3906_v38  ;;  %v1567_v54 = vld [vmem:[%s3616_s29 + $0x21] sm:$0x1] }
 0x25b   : > { %v1914_v25 = vsel %vm243_vm1, %v1913_v61, %v1567_v54  ;;  %v1615_v53 = vmul.f32 0.015625, %v1567_v54  ;;  %v1777_v54 = vrot.slane %v1610_v46, 5  ;;  %v1781_v46 = vrot.slane %v1612_v24, 3  ;;  %v4030_v24 = vld [vmem:[%s3616_s29 + $0x3b] sm:$0x1] }
 0x25c   : > { %v1077_v57 = vsub.f32 2.0, %v1071_v49  ;;  %v1916_v45 = vsel %vm246_vm2, %v1915_v26, %v1914_v25  ;;  %v3958_v49 = vsel %vm261_vm7, %v1667_v5, %v1666_v32  ;;  %v1619_v25 = vmul.f32 0.015625, %v1571_v41 }
 0x25d   : > { %v1918_v40 = vsel %vm249_vm3, %v1917_v42, %v1916_v45  ;;  %v1613_v26 = vmul.f32 0.015625, %v1565_v22  ;;  %v1778_v35 = vsel %vm249_vm3, %v1777_v54, %v1776_v13  ;;  %v1584_v45 = vld [vmem:[%s3616_s29 + $0x43] sm:$0x1]  ;;  %v1586_v13 = vld [vmem:[%s3616_s29 + $0x47] sm:$0x1] }
 0x25e   : > { %v1083_v10 = vmul.f32 %v3349_v43, %v1077_v57  ;;  %v1043_v12 = vpop.xlane.xlu0 %1042  ;;  %v1572_v43 = vld [vmem:[%s3616_s29 + $0x2b] sm:$0x1]  ;;  %v1919_v57 = vrot.slane %v1571_v41, 4  ;;  %v2149_v1 = vrot.slane %v1584_v45, 7 }
 0x25f   : > { %v3929_v20 = vadd.f32 %v3900_v29, %v1043_v12  ;;  %v1921_v3 = vrot.slane %v1572_v43, 3  ;;  %v1620_v42 = vmul.f32 0.015625, %v1572_v43  ;;  %v3998_v43 = vmul.f32 0.015625, %v3937_v28 }
 0x260   : > { %v1089_v9 = vmul.f32 %v3851_v4, %v1083_v10  ;;  %v3940_v2 = vmul.f32 %v1083_v10, %v3879_v50  ;;  %v1802_v4 = vsel %vm252_vm4, %v1801_v18, %v1800_v23  ;;  %v1807_v50 = vrot.slane %v3937_v28, 1  ;;  %v1574_v23 = vld [vmem:[%s3616_s29 + $0x2f] sm:$0x1] }
 0x261   : > { %3352 = vrcp.f32 %v3929_v20  ;;  %v1804_v61 = vsel %vm255_vm5, %v1803_v36, %v1802_v4  ;;  %v1893_v10 = vrot.slane %v1617_v47, 6  ;;  %v1920_v60 = vsel %vm252_vm4, %v1919_v57, %v1918_v40  ;;  %v1585_v57 = vld [vmem:[%s3616_s29 + $0x45] sm:$0x1] }
 0x262   : > { %3183 = vmatmul.mubr.msk.f32.vlgmr.msra.gmra.mrb[6].mxu0 %vm974_vm9, %v1089_v9  ;;  %v1779_v9 = vrot.slane %v1611_v7, 4  ;;  %v1922_v41 = vsel %vm255_vm5, %v1921_v3, %v1920_v60  ;;  %v1925_v22 = vrot.slane %v1574_v23, 1  ;;  %v1897_v47 = vrot.slane %v1619_v25, 4  ;;  %v4027_v60 = vld [vmem:[%s3616_s29 + $0x39] sm:$0x1] }
 0x263   : > { %3191 = vmatpush3.msra.mxu0 %v3707_v44  ;;  %3192 = vmatprep.mubr.msk.f32.mxu0 %vm3498_vm0, %v3497_v0  ;;  %v1891_v44 = vrot.slane %v1616_v14, 7  ;;  %v3975_v14 = vld [vmem:[%s3616_s29 + $0x33] sm:$0x1]  ;;  %v1622_v3 = vmul.f32 0.015625, %v1574_v23  ;;  %v1899_v7 = vrot.slane %v1620_v42, 3  ;;  %v1632_v42 = vmul.f32 0.015625, %v1584_v45 }
 0x264   : > { %v3351_v48 = vpop.eup %3350  ;;  %3200 = vmatprep.subr.mxu0 %v3497_v0 }
 0x265   : > { %v1072_v56 = vmul.f32 %v3351_v48, %v3906_v38  ;;  %v1806_v38 = vsel %vm258_vm6, %v1805_v19, %v1804_v61  ;;  %v1892_v16 = vsel %vm243_vm1, %v1891_v44, %v1615_v53  ;;  %v4004_v44 = vld [vmem:[%s3616_s29 + $0x37] sm:$0x1]  ;;  %v1783_v61 = vrot.slane %v1613_v26, 2 }
 0x266   : > { %v1894_v4 = vsel %vm246_vm2, %v1893_v10, %v1892_v16  ;;  %v2151_v16 = vrot.slane %v1585_v57, 6 }
 0x267   : > { %v1078_v63 = vsub.f32 2.0, %v1072_v56  ;;  %v1046_v5 = vpop.xlane.xlu1 %1045  ;;  %v1896_v53 = vsel %vm249_vm3, %v1895_v6, %v1894_v4  ;;  %v1924_v56 = vsel %vm258_vm6, %v1923_v8, %v1922_v41  ;;  %v1587_v41 = vld [vmem:[%s3616_s29 + $0x49] sm:$0x1] }
 0x268   : > { %v3966_v12 = vadd.f32 %v3902_v30, %v1046_v5  ;;  %v1898_v8 = vsel %vm252_vm4, %v1897_v47, %v1896_v53  ;;  %v2037_v47 = vrot.slane %v4027_v60, 4 }
 0x269   : > { %v1084_v18 = vmul.f32 %v3351_v48, %v1078_v63  ;;  %v3991_v48 = vld [vmem:[%s3616_s29 + $0x35] sm:$0x1]  ;;  %v1583_v63 = vld [vmem:[%s3616_s29 + $0x41] sm:$0x1]  ;;  %v1900_v6 = vsel %vm255_vm5, %v1899_v7, %v1898_v8  ;;  %v2127_v7 = vrot.slane %v1632_v42, 7 }
 0x26a   : > { %3354 = vrcp.f32 %v3966_v12  ;;  %v2033_v62 = vrot.slane %v3991_v48, 6  ;;  %v2150_v25 = vsel %vm243_vm1, %v2149_v1, %v1583_v63  ;;  %v1593_v42 = vld [vmem:[%s3616_s29 + $0x55] sm:$0x1] }
 0x26b   : > { %v3353_v32 = vpop.eup %3352  ;;  %v1090_v36 = vmul.f32 %v3855_v11, %v1084_v18  ;;  %v3981_v19 = vmul.f32 %v1084_v18, %v3891_v58  ;;  %v3988_v11 = vsel %vm261_vm7, %v1807_v50, %v1806_v38  ;;  %v2031_v58 = vrot.slane %v3975_v14, 7 }
 0x26c   : > { %v1073_v15 = vmul.f32 %v3353_v32, %v3929_v20  ;;  %v1780_v50 = vsel %vm252_vm4, %v1779_v9, %v1778_v35  ;;  %v4019_v38 = vsel %vm261_vm7, %v1925_v22, %v1924_v56  ;;  %v2153_v22 = vrot.slane %v1586_v13, 5  ;;  %v1588_v56 = vld [vmem:[%s3616_s29 + $0x4b] sm:$0x1] }
 0x26d   : > { %3188 = vmatmul.mubr.msk.f32.vlgmr.msra.gmra.mrb[6].mxu1 %vm974_vm9, %v1090_v36  ;;  %v1782_v54 = vsel %vm255_vm5, %v1781_v46, %v1780_v50  ;;  %v4044_v36 = vld [vmem:[%s3616_s29 + $0x3f] sm:$0x1]  ;;  %v1623_v46 = vmul.f32 0.015625, %v1575_v59 }
 0x26e   : > { %v1079_v20 = vsub.f32 2.0, %v1073_v15  ;;  %3196 = vmatpush3.msra.mxu1 %v3757_v51  ;;  %3197 = vmatprep.mubr.msk.f32.mxu1 %vm3498_vm0, %v3497_v0  ;;  %v1621_v51 = vmul.f32 0.015625, %v1573_v52  ;;  %v2032_v52 = vsel %vm243_vm1, %v2031_v58, %v1575_v59  ;;  %v4036_v9 = vsel %vm258_vm6, %v1783_v61, %v1782_v54 }
 0x26f   : > { %3205 = vmatprep.subr.mxu1 %v3497_v0  ;;  %v2034_v35 = vsel %vm246_vm2, %v2033_v62, %v2032_v52  ;;  %v1903_v15 = vrot.slane %v1622_v3, 1  ;;  %v2039_v58 = vrot.slane %v4030_v24, 3  ;;  %v2043_v45 = vrot.slane %v4044_v36, 1  ;;  %v4071_v52 = vld [vmem:[%s3616_s29 + $0x4d] sm:$0x1] }
 0x270   : > { %v1085_v40 = vmul.f32 %v3353_v32, %v1079_v20  ;;  %v1049_v28 = vpop.xlane.xlu0 %1048  ;;  %v1901_v23 = vrot.slane %v1621_v51, 2  ;;  %v4041_v32 = vld [vmem:[%s3616_s29 + $0x3d] sm:$0x1]  ;;  %v2152_v20 = vsel %vm246_vm2, %v2151_v16, %v2150_v25  ;;  %v2155_v61 = vrot.slane %v1587_v41, 4 }
 0x271   : > { %v4012_v5 = vadd.f32 %v3908_v39, %v1049_v28  ;;  %v2041_v53 = vrot.slane %v4041_v32, 2  ;;  %v1624_v59 = vmul.f32 0.015625, %v3975_v14  ;;  %v1633_v51 = vmul.f32 0.015625, %v1585_v57  ;;  %v4075_v57 = vld [vmem:[%s3616_s29 + $0x4f] sm:$0x1] }
 0x272   : > { %v1091_v10 = vmul.f32 %v3861_v21, %v1085_v40  ;;  %v4023_v18 = vmul.f32 %v1085_v40, %v3900_v29  ;;  %v2035_v21 = vrot.slane %v4004_v44, 5  ;;  %v1785_v29 = vrot.slane %v3998_v43, 1 }
 0x273   : > { %3356 = vrcp.f32 %v4012_v5  ;;  %v1902_v50 = vsel %vm258_vm6, %v1901_v23, %v1900_v6  ;;  %v1631_v28 = vmul.f32 0.015625, %v1583_v63  ;;  %v2154_v3 = vsel %vm249_vm3, %v2153_v22, %v2152_v20  ;;  %v1592_v23 = vld [vmem:[%s3616_s29 + $0x53] sm:$0x1] }
 0x274   : > { %v3355_v26 = vpop.eup %3354  ;;  %3193 = vmatmul.mubr.msk.f32.vlgmr.msra.gmra.mrb[8].mxu0 %vm974_vm9, %v1091_v10  ;;  %v4067_v54 = vsel %vm261_vm7, %v1903_v15, %v1902_v50  ;;  %v2157_v10 = vrot.slane %v1588_v56, 3  ;;  %v1625_v63 = vmul.f32 0.015625, %v3991_v48  ;;  %v1634_v16 = vmul.f32 0.015625, %v1586_v13 }
 0x275   : > { %v1074_v4 = vmul.f32 %v3355_v26, %v3966_v12  ;;  %3201 = vmatpush3.msra.mxu0 %v3790_v37  ;;  %3202 = vmatprep.mubr.msk.f32.mxu0 %vm3498_vm0, %v3497_v0  ;;  %v2036_v37 = vsel %vm249_vm3, %v2035_v21, %v2034_v35  ;;  %v2156_v25 = vsel %vm252_vm4, %v2155_v61, %v2154_v3  ;;  %v2129_v6 = vrot.slane %v1633_v51, 6 }
 0x276   : > { %3210 = vmatprep.subr.mxu0 %v3497_v0  ;;  %v2038_v8 = vsel %vm252_vm4, %v2037_v47, %v2036_v37  ;;  %v2159_v48 = vrot.slane %v4071_v52, 2  ;;  %v1635_v13 = vmul.f32 0.015625, %v1587_v41  ;;  %v2161_v15 = vrot.slane %v4075_v57, 1 }
 0x277   : > { %v1080_v12 = vsub.f32 2.0, %v1074_v4  ;;  %v1626_v22 = vmul.f32 0.015625, %v4004_v44  ;;  %v1640_v47 = vmul.f32 0.015625, %v1592_v23  ;;  %v2158_v41 = vsel %vm255_vm5, %v2157_v10, %v2156_v25 }
 0x278   : > { %v2131_v20 = vrot.slane %v1634_v16, 5  ;;  %v4104_v44 = vmul.f32 0.015625, %v4030_v24  ;;  %v2133_v51 = vrot.slane %v1635_v13, 4  ;;  %v1637_v24 = vmul.f32 0.015625, %v4071_v52  ;;  %v1595_v16 = vld [vmem:[%s3616_s29 + $0x59] sm:$0x1] }
 0x279   : > { %v1086_v1 = vmul.f32 %v3355_v26, %v1080_v12  ;;  %v1052_v40 = vpop.xlane.xlu1 %1051  ;;  %v2009_v26 = vrot.slane %v1624_v59, 7  ;;  %v1591_v12 = vld [vmem:[%s3616_s29 + $0x51] sm:$0x1]  ;;  %v1636_v59 = vmul.f32 0.015625, %v1588_v56  ;;  %v4117_v25 = vmul.f32 0.015625, %v4041_v32 }
 0x27a   : > { %v4064_v62 = vadd.f32 %v3917_v55, %v1052_v40  ;;  %v1641_v40 = vmul.f32 0.015625, %v1593_v42  ;;  %v1639_v3 = vmul.f32 0.015625, %v1591_v12  ;;  %v1786_v32 = vsel %vm261_vm7, %v1785_v29, %v4036_v9 }
 0x27b   : > { %v1092_v14 = vmul.f32 %v3865_v27, %v1086_v1  ;;  %v4080_v21 = vmul.f32 %v1086_v1, %v3902_v30  ;;  %v4086_v27 = vsel %vm255_vm5, %v2039_v58, %v2038_v8  ;;  %v2128_v30 = vsel %vm243_vm1, %v2127_v7, %v1631_v28  ;;  %v1594_v1 = vld [vmem:[%s3616_s29 + $0x57] sm:$0x1] }
 0x27c   : > { %3358 = vrcp.f32 %v4064_v62  ;;  %v2011_v58 = vrot.slane %v1625_v63, 6  ;;  %v2010_v37 = vsel %vm243_vm1, %v2009_v26, %v1623_v46  ;;  %v2130_v61 = vsel %vm246_vm2, %v2129_v6, %v2128_v30 }
 0x27d   : > { %v3357_v35 = vpop.eup %3356  ;;  %3198 = vmatmul.mubr.msk.f32.vlgmr.msra.gmra.mrb[8].mxu1 %vm974_vm9, %v1092_v14  ;;  %v2269_v7 = vrot.slane %v1593_v42, 6  ;;  %v2245_v8 = vrot.slane %v1640_v47, 7  ;;  %v2013_v14 = vrot.slane %v1626_v22, 5  ;;  %v1642_v56 = vmul.f32 0.015625, %v1594_v1  ;;  %v1596_v47 = vld [vmem:[%s3616_s29 + $0x5b] sm:$0x1] }
 0x27e   : > { %v1075_v4 = vmul.f32 %v3357_v35, %v4012_v5  ;;  %3206 = vmatpush3.msra.mxu1 %v3815_v17  ;;  %3207 = vmatprep.mubr.msk.f32.mxu1 %vm3498_vm0, %v3497_v0  ;;  %v2267_v5 = vrot.slane %v1592_v23, 7  ;;  %v1627_v17 = vmul.f32 0.015625, %v4027_v60  ;;  %v2012_v10 = vsel %vm246_vm2, %v2011_v58, %v2010_v37 }
 0x27f   : > { %3215 = vmatprep.subr.mxu1 %v3497_v0  ;;  %v2132_v60 = vsel %vm249_vm3, %v2131_v20, %v2130_v61  ;;  %v2135_v26 = vrot.slane %v1636_v59, 3  ;;  %v2271_v6 = vrot.slane %v1594_v1, 5  ;;  %v2014_v22 = vsel %vm249_vm3, %v2013_v14, %v2012_v10 }
 0x280   : > { %v1081_v50 = vsub.f32 2.0, %v1075_v4  ;;  %v2268_v46 = vsel %vm243_vm1, %v2267_v5, %v1591_v12  ;;  %v2015_v30 = vrot.slane %v1627_v17, 4  ;;  %v2246_v4 = vsel %vm243_vm1, %v2245_v8, %v1639_v3 }
 0x281   : > { %v2270_v52 = vsel %vm246_vm2, %v2269_v7, %v2268_v46  ;;  %v1638_v42 = vmul.f32 0.015625, %v4075_v57  ;;  %v1643_v58 = vmul.f32 0.015625, %v1595_v16  ;;  %v2160_v20 = vsel %vm258_vm6, %v2159_v48, %v2158_v41  ;;  %v1597_v48 = vld [vmem:[%s3616_s29 + $0x5d] sm:$0x1] }
 0x282   : > { %v1087_v28 = vmul.f32 %v3357_v35, %v1081_v50  ;;  %v2247_v35 = vrot.slane %v1641_v40, 6  ;;  %v2137_v12 = vrot.slane %v1637_v24, 2  ;;  %v2273_v5 = vrot.slane %v1595_v16, 4 }
 0x283   : > { %v2272_v37 = vsel %vm249_vm3, %v2271_v6, %v2270_v52  ;;  %v1630_v59 = vmul.f32 0.015625, %v4044_v36  ;;  %v2017_v1 = vrot.slane %v4104_v44, 3  ;;  %v1644_v41 = vmul.f32 0.015625, %v1596_v47 }
 0x284   : > { %v1093_v63 = vmul.f32 %v3869_v31, %v1087_v28  ;;  %v4114_v23 = vmul.f32 %v1087_v28, %v3908_v39  ;;  %v2134_v31 = vsel %vm252_vm4, %v2133_v51, %v2132_v60  ;;  %v2248_v61 = vsel %vm246_vm2, %v2247_v35, %v2246_v4 }
 0x285   : > { %v2136_v17 = vsel %vm255_vm5, %v2135_v26, %v2134_v31  ;;  %v2016_v51 = vsel %vm252_vm4, %v2015_v30, %v2014_v22  ;;  %v2139_v28 = vrot.slane %v1638_v42, 1  ;;  %v2275_v3 = vrot.slane %v1596_v47, 3 }
 0x286   : > { %v3359_v13 = vpop.eup %3358  ;;  %3203 = vmatmul.mubr.msk.f32.vlgmr.msra.gmra.mrb[10].mxu0 %vm974_vm9, %v1093_v63  ;;  %v2251_v7 = vrot.slane %v1643_v58, 4  ;;  %v4150_v8 = vsel %vm261_vm7, %v2161_v15, %v2160_v20  ;;  %v2138_v44 = vsel %vm258_vm6, %v2137_v12, %v2136_v17  ;;  %v2274_v10 = vsel %vm252_vm4, %v2273_v5, %v2272_v37  ;;  %v1598_v63 = vld [vmem:[%s3616_s29 + $0x5f] sm:$0x1] }
 0x287   : > { %v1076_v39 = vmul.f32 %v3359_v13, %v4064_v62  ;;  %3211 = vmatpush3.xpose.msk.msra.mxu0 %vm285_vm8, %v3946_v33  ;;  %3212 = vmatprep.mubr.msk.f32.mxu0 %vm3498_vm0, %v3497_v0  ;;  %v2249_v62 = vrot.slane %v1642_v56, 5  ;;  %v2019_v46 = vrot.slane %v4117_v25, 2  ;;  %v1645_v24 = vmul.f32 0.015625, %v1597_v48 }
 0x288   : > { %3220 = vmatprep.subr.mxu0 %v3497_v0  ;;  %v2042_v57 = vsel %vm258_vm6, %v2041_v53, %v4086_v27  ;;  %v2018_v15 = vsel %vm255_vm5, %v2017_v1, %v2016_v51  ;;  %v2277_v56 = vrot.slane %v1597_v48, 2  ;;  %v2253_v26 = vrot.slane %v1644_v41, 3 }
 0x289   : > { %v1082_v50 = vsub.f32 2.0, %v1076_v39  ;;  %v2250_v14 = vsel %vm249_vm3, %v2249_v62, %v2248_v61  ;;  %v2021_v53 = vrot.slane %v1630_v59, 1  ;;  %v1646_v27 = vmul.f32 0.015625, %v1598_v63 }
 0x28a   : > { %3213 = vmatmul.mubr.msk.f32.vlgmr.msra.gmra.mrb[12].mxu0 %vm285_vm8, %v3958_v49  ;;  %v2252_v25 = vsel %vm252_vm4, %v2251_v7, %v2250_v14  ;;  %v4186_v6 = vsel %vm261_vm7, %v2043_v45, %v2042_v57  ;;  %v2020_v35 = vsel %vm258_vm6, %v2019_v46, %v2018_v15  ;;  %v2255_v30 = vrot.slane %v1645_v24, 2 }
 0x28b   : > { %v1088_v40 = vmul.f32 %v3359_v13, %v1082_v50  ;;  %3221 = vmatpush3.xpose.msk.msra.mxu0 %vm285_vm8, %v4019_v38  ;;  %3222 = vmatprep.mubr.msk.f32.mxu0 %vm3498_vm0, %v3497_v0  ;;  %v2279_v13 = vrot.slane %v1598_v63, 1  ;;  %v2254_v9 = vsel %vm255_vm5, %v2253_v26, %v2252_v25  ;;  %v2022_v29 = vsel %vm261_vm7, %v2021_v53, %v2020_v35 }
 0x28c   : > { %3230 = vmatprep.subr.mxu0 %v3497_v0  ;;  %v2257_v36 = vrot.slane %v1646_v27, 1  ;;  %v2256_v31 = vsel %vm258_vm6, %v2255_v30, %v2254_v9  ;;  %v2361_v52 = vsel %vm285_vm8, %v3958_v49, 0.0  ;;  %v2364_v4 = vsel %vm285_vm8, %v1786_v32, 0.0 }
 0x28d   : > { %v1094_v60 = vmul.f32 %v3873_v34, %v1088_v40  ;;  %v4159_v16 = vmul.f32 %v1088_v40, %v3917_v55  ;;  %v2140_v34 = vsel %vm261_vm7, %v2139_v28, %v2138_v44  ;;  %v2276_v55 = vsel %vm255_vm5, %v2275_v3, %v2274_v10  ;;  %2362 = vadd.xlane.f32.xlu0 %v2361_v52 }
 0x28e   : > { %3223 = vmatmul.mubr.msk.f32.vlgmr.msra.gmra.mrb[14].mxu0 %vm285_vm8, %v4067_v54  ;;  %v2278_v43 = vsel %vm258_vm6, %v2277_v56, %v2276_v55  ;;  %v2367_v39 = vsel %vm285_vm8, %v4067_v54, 0.0  ;;  %2365 = vadd.xlane.f32.xlu1 %v2364_v4  ;;  %v2370_v22 = vsel %vm285_vm8, %v2022_v29, 0.0 }
 0x28f   : > { %3208 = vmatmul.mubr.msk.f32.vlgmr.msra.gmra.mrb[10].mxu1 %vm974_vm9, %v1094_v60  ;;  %3231 = vmatpush3.xpose.msk.msra.mxu0 %vm285_vm8, %v4150_v8  ;;  %v4204_v45 = vsel %vm261_vm7, %v2279_v13, %v2278_v43 }
 0x290   : > { %3216 = vmatpush3.xpose.msk.msra.mxu1 %vm285_vm8, %v3988_v11  ;;  %3217 = vmatprep.mubr.msk.f32.mxu1 %vm3498_vm0, %v3497_v0 }
 0x291   : > { %3225 = vmatprep.subr.mxu1 %v3497_v0  ;;  %3232 = vmatprep.mubr.msk.f32.mxu0 %vm3498_vm0, %v3497_v0 }
 0x292   : > { %3233 = vmatmul.mubr.msk.f32.vlgmr.msra.gmra.mrb[16].mxu0 %vm285_vm8, %v2140_v34  ;;  %3240 = vmatprep.subr.mxu0 %v3497_v0 }
 0x293   : > { %3218 = vmatmul.mubr.msk.f32.vlgmr.msra.gmra.mrb[12].mxu1 %vm285_vm8, %v1786_v32  ;;  %3241 = vmatpush3.msra.mxu0 %v3946_v33  ;;  %v2258_v33 = vsel %vm261_vm7, %v2257_v36, %v2256_v31 }
 0x294   : > { %3226 = vmatpush3.xpose.msk.msra.mxu1 %vm285_vm8, %v4186_v6  ;;  %3227 = vmatprep.mubr.msk.f32.mxu1 %vm3498_vm0, %v3497_v0  ;;  %v2376_v42 = vsel %vm285_vm8, %v2258_v33, 0.0 }
 0x295   : > { %3235 = vmatprep.subr.mxu1 %v3497_v0  ;;  %3242 = vmatprep.mubr.msk.f32.mxu0 %vm3498_vm0, %v3497_v0 }
 0x296   : > { %3250 = vmatprep.subr.mxu0 %v3497_v0  ;;  %2368 = vadd.xlane.f32.xlu0 %v2367_v39 }
 0x297   : > { %3228 = vmatmul.mubr.msk.f32.vlgmr.msra.gmra.mrb[14].mxu1 %vm285_vm8, %v2022_v29  ;;  %2371 = vadd.xlane.f32.xlu1 %v2370_v22 }
 0x298   : > { %3236 = vmatpush3.xpose.msk.msra.mxu1 %vm285_vm8, %v4204_v45  ;;  %3237 = vmatprep.mubr.msk.f32.mxu1 %vm3498_vm0, %v3497_v0 }
 0x299   : > { %3245 = vmatprep.subr.mxu1 %v3497_v0 }
 0x29b   : > { %3238 = vmatmul.mubr.msk.f32.vlgmr.msra.gmra.mrb[16].mxu1 %vm285_vm8, %v2258_v33  ;;  %2377 = vadd.xlane.f32.xlu1 %v2376_v42 }
 0x29c   : > { %3246 = vmatpush3.msra.mxu1 %v3988_v11  ;;  %3247 = vmatprep.mubr.msk.f32.mxu1 %vm3498_vm0, %v3497_v0  ;;  %v2373_v11 = vsel %vm285_vm8, %v2140_v34, 0.0 }
 0x29d   : > { %3255 = vmatprep.subr.mxu1 %v3497_v0  ;;  %2374 = vadd.xlane.f32.xlu0 %v2373_v11 }
 0x31a   : > { %v2363_v56 = vpop.xlane.xlu0 %2362 }
 0x31b   : > { %v2366_v34 = vpop.xlane.xlu1 %2365 }
 0x323   : > { %v2369_v26 = vpop.xlane.xlu0 %2368 }
 0x324   : > { %v4258_v25 = vpop.xlane.xlu1 %2371 }
 0x328   : > { %v4260_v27 = vpop.xlane.xlu1 %2377 }
 0x32a   : > { %v2375_v55 = vpop.xlane.xlu0 %2374 }
 0x335   : > { %v1171_v47 = vpop.f32.mrb[6].mxu0 }
 0x336   : > { %v1172_v49 = vadd.f32 %v1171_v47, %v3940_v2  ;;  %v3184_v58 = vpop.f32.mrb[7].mxu0 }
 0x338   : > { %1545 = vst.msk [vmem:[%s4233_s16] sm:$0xff] %vm285_vm8, %v1172_v49 }
 0x340   : > { %v1245_v54 = vpop.f32.mrb[6].mxu1 }
 0x341   : > { %v1246_v20 = vadd.f32 %v1245_v54, %v3981_v19  ;;  %v3189_v12 = vpop.f32.mrb[7].mxu1 }
 0x343   : > { %1546 = vst.msk [vmem:[%s4233_s16 + $0x10] sm:$0xff] %vm285_vm8, %v1246_v20 }
 0x347   : > { %v1319_v5 = vpop.f32.mrb[8].mxu0 }
 0x348   : > { %v1320_v2 = vadd.f32 %v1319_v5, %v4023_v18  ;;  %v3194_v62 = vpop.f32.mrb[9].mxu0 }
 0x34a   : > { %1547 = vst.msk [vmem:[%s4233_s16 + $0x20] sm:$0xff] %vm285_vm8, %v1320_v2 }
 0x350   : > { %v1393_v50 = vpop.f32.mrb[8].mxu1 }
 0x351   : > { %v1394_v17 = vadd.f32 %v1393_v50, %v4080_v21  ;;  %v3199_v37 = vpop.f32.mrb[9].mxu1 }
 0x353   : > { %1548 = vst.msk [vmem:[%s4233_s16 + $0x30] sm:$0xff] %vm285_vm8, %v1394_v17 }
 0x359   : > { %v1467_v61 = vpop.f32.mrb[10].mxu0 }
 0x35a   : > { %v1468_v59 = vadd.f32 %v1467_v61, %v4114_v23  ;;  %v3204_v19 = vpop.f32.mrb[11].mxu0 }
 0x35c   : > { %1549 = vst.msk [vmem:[%s4233_s16 + $0x40] sm:$0xff] %vm285_vm8, %v1468_v59 }
 0x35d   : > { %v1761_v51 = vpop.f32.mrb[12].mxu0 }
 0x35e   : > { %v2379_v1 = vsel %vm974_vm9, %v1761_v51, -inf  ;;  %v3214_v18 = vpop.f32.mrb[13].mxu0 }
 0x35f   : > { %2380 = vmax.xlane.f32.xlu0 %v2379_v1 }
 0x361   : > { %v1997_v48 = vpop.f32.mrb[14].mxu0 }
 0x362   : > { %v1541_v41 = vpop.f32.mrb[10].mxu1  ;;  %v2385_v40 = vsel %vm974_vm9, %v1997_v48, -inf  ;;  %v3224_v21 = vpop.f32.mrb[15].mxu0 }
 0x363   : > { %v1542_v28 = vadd.f32 %v1541_v41, %v4159_v16  ;;  %v3209_v3 = vpop.f32.mrb[11].mxu1  ;;  %2386 = vmax.xlane.f32.xlu0 %v2385_v40 }
 0x365   : > { %1550 = vst.msk [vmem:[%s4233_s16 + $0x50] sm:$0xff] %vm285_vm8, %v1542_v28  ;;  %v2233_v23 = vpop.f32.mrb[16].mxu0 }
 0x366   : > { %v1879_v7 = vpop.f32.mrb[12].mxu1  ;;  %v2391_v44 = vsel %vm974_vm9, %v2233_v23, -inf  ;;  %v3234_v10 = vpop.f32.mrb[17].mxu0 }
 0x367   : > { %v3219_v14 = vpop.f32.mrb[13].mxu1  ;;  %v2382_v60 = vsel %vm974_vm9, %v1879_v7, -inf  ;;  %2392 = vmax.xlane.f32.xlu0 %v2391_v44 }
 0x368   : > { %2383 = vmax.xlane.f32.xlu1 %v2382_v60 }
 0x36a   : > { %v2115_v46 = vpop.f32.mrb[14].mxu1 }
 0x36b   : > { %v3229_v63 = vpop.f32.mrb[15].mxu1  ;;  %v2388_v24 = vsel %vm974_vm9, %v2115_v46, -inf }
 0x36c   : > { %2389 = vmax.xlane.f32.xlu1 %v2388_v24 }
 0x36e   : > { %v2351_v16 = vpop.f32.mrb[16].mxu1 }
 0x36f   : > { %v3239_v57 = vpop.f32.mrb[17].mxu1  ;;  %v2394_v15 = vsel %vm974_vm9, %v2351_v16, -inf }
 0x370   : > { %2395 = vmax.xlane.f32.xlu1 %v2394_v15 }
 0x3ec   : > { %v2381_v32 = vpop.xlane.xlu0 %2380 }
 0x3ed   : > { %v2397_v53 = vmax.f32 %v2381_v32, %v2363_v56 }
 0x3ef   : > { %v2403_v35 = vsub.f32 %v1761_v51, %v2397_v53  ;;  %v2421_v21 = vsub.f32 %v2363_v56, %v2397_v53 }
 0x3f0   : > { %v2387_v13 = vpop.xlane.xlu0 %2386 }
 0x3f1   : > { %v2409_v30 = vmul.f32 1.442695, %v2403_v35  ;;  %v2399_v43 = vmax.f32 %v2387_v13, %v2369_v26  ;;  %v2427_v28 = vmul.f32 1.442695, %v2421_v21 }
 0x3f3   : > { %3360 = vpow2.f32 %v2409_v30  ;;  %v2405_v9 = vsub.f32 %v1997_v48, %v2399_v43  ;;  %v2423_v3 = vsub.f32 %v2369_v26, %v2399_v43 }
 0x3f4   : > { %v2393_v29 = vpop.xlane.xlu0 %2392 }
 0x3f5   : > { %v2384_v36 = vpop.xlane.xlu1 %2383  ;;  %v2413_v31 = vmul.f32 1.442695, %v2405_v9  ;;  %v2401_v33 = vmax.f32 %v2393_v29, %v2375_v55 }
 0x3f6   : > { %v2398_v52 = vmax.f32 %v2384_v36, %v2366_v34 }
 0x3f7   : > { %3362 = vpow2.f32 %v2413_v31  ;;  %v2407_v4 = vsub.f32 %v2233_v23, %v2401_v33  ;;  %v2425_v39 = vsub.f32 %v2375_v55, %v2401_v33 }
 0x3f8   : > { %v2404_v22 = vsub.f32 %v1879_v7, %v2398_v52  ;;  %v2422_v23 = vsub.f32 %v2366_v34, %v2398_v52  ;;  %v2431_v7 = vmul.f32 1.442695, %v2423_v3 }
 0x3f9   : > { %v2390_v11 = vpop.xlane.xlu1 %2389  ;;  %v2417_v42 = vmul.f32 1.442695, %v2407_v4  ;;  %v2435_v14 = vmul.f32 1.442695, %v2425_v39 }
 0x3fa   : > { %v2411_v47 = vmul.f32 1.442695, %v2404_v22  ;;  %v2400_v49 = vmax.f32 %v2390_v11, %v4258_v25  ;;  %v2429_v44 = vmul.f32 1.442695, %v2422_v23 }
 0x3fb   : > { %3364 = vpow2.f32 %v2417_v42 }
 0x3fc   : > { %3366 = vpow2.f32 %v2411_v47  ;;  %v2406_v58 = vsub.f32 %v2115_v46, %v2400_v49  ;;  %v2424_v10 = vsub.f32 %v4258_v25, %v2400_v49 }
 0x3fd   : > { %v4263_v54 = vpop.eup %3360  ;;  %v2396_v20 = vpop.xlane.xlu1 %2395 }
 0x3fe   : > { %v2415_v12 = vmul.f32 1.442695, %v2406_v58  ;;  %v2402_v5 = vmax.f32 %v2396_v20, %v4260_v27  ;;  %v2439_v2 = vsel %vm974_vm9, %v4263_v54, 0.0  ;;  %v2433_v60 = vmul.f32 1.442695, %v2424_v10 }
 0x3ff   : > { %2440 = vadd.xlane.f32.xlu0 %v2439_v2 }
 0x400   : > { %3368 = vpow2.f32 %v2415_v12  ;;  %v2408_v62 = vsub.f32 %v2351_v16, %v2402_v5  ;;  %v2426_v50 = vsub.f32 %v4260_v27, %v2402_v5 }
 0x401   : > { %v4269_v17 = vpop.eup %3362 }
 0x402   : > { %v2419_v37 = vmul.f32 1.442695, %v2408_v62  ;;  %v2445_v61 = vsel %vm974_vm9, %v4269_v17, 0.0  ;;  %v2437_v63 = vmul.f32 1.442695, %v2426_v50 }
 0x403   : > { %2446 = vadd.xlane.f32.xlu0 %v2445_v61 }
 0x404   : > { %3370 = vpow2.f32 %v2419_v37 }
 0x405   : > { %v4273_v59 = vpop.eup %3364  ;;  %3372 = vpow2.f32 %v2427_v28 }
 0x406   : > { %v4275_v19 = vpop.eup %3366  ;;  %v2451_v51 = vsel %vm974_vm9, %v4273_v59, 0.0  ;;  %3374 = vpow2.f32 %v2431_v7 }
 0x407   : > { %v2442_v1 = vsel %vm974_vm9, %v4275_v19, 0.0  ;;  %2452 = vadd.xlane.f32.xlu0 %v2451_v51  ;;  %3376 = vpow2.f32 %v2429_v44 }
 0x408   : > { %2443 = vadd.xlane.f32.xlu1 %v2442_v1  ;;  %3378 = vpow2.f32 %v2435_v14 }
 0x409   : > { %3380 = vpow2.f32 %v2433_v60 }
 0x40a   : > { %v4281_v18 = vpop.eup %3368  ;;  %3382 = vpow2.f32 %v2437_v63 }
 0x40b   : > { %v2448_v48 = vsel %vm974_vm9, %v4281_v18, 0.0 }
 0x40c   : > { %2449 = vadd.xlane.f32.xlu1 %v2448_v48 }
 0x40e   : > { %v4285_v41 = vpop.eup %3370 }
 0x40f   : > { %v2454_v40 = vsel %vm974_vm9, %v4285_v41, 0.0  ;;  %v3373_v46 = vpop.eup %3372 }
 0x410   : > { %2455 = vadd.xlane.f32.xlu1 %v2454_v40  ;;  %v2457_v24 = vmul.f32 15.0, %v3373_v46  ;;  %v3375_v16 = vpop.eup %3374 }
 0x411   : > { %v3377_v56 = vpop.eup %3376  ;;  %v2459_v26 = vmul.f32 15.0, %v3375_v16 }
 0x412   : > { %v3379_v34 = vpop.eup %3378  ;;  %v2458_v53 = vmul.f32 15.0, %v3377_v56 }
 0x413   : > { %v2461_v25 = vmul.f32 15.0, %v3379_v34  ;;  %v3381_v27 = vpop.eup %3380 }
 0x414   : > { %v2460_v9 = vmul.f32 15.0, %v3381_v27  ;;  %v3383_v29 = vpop.eup %3382 }
 0x415   : > { %v2462_v4 = vmul.f32 15.0, %v3383_v29 }
 0x48c   : > { %v2441_v57 = vpop.xlane.xlu0 %2440 }
 0x48d   : > { %v2463_v15 = vadd.f32 %v2457_v24, %v2441_v57 }
 0x48f   : > { %3384 = vrcp.f32 %v2463_v15 }
 0x490   : > { %v2447_v55 = vpop.xlane.xlu0 %2446 }
 0x491   : > { %v2465_v32 = vadd.f32 %v2459_v26, %v2447_v55 }
 0x493   : > { %3386 = vrcp.f32 %v2465_v32 }
 0x494   : > { %v2453_v13 = vpop.xlane.xlu0 %2452 }
 0x495   : > { %v2444_v35 = vpop.xlane.xlu1 %2443  ;;  %v2467_v43 = vadd.f32 %v2461_v25, %v2453_v13 }
 0x496   : > { %v2464_v30 = vadd.f32 %v2458_v53, %v2444_v35 }
 0x498   : > { %3388 = vrcp.f32 %v2464_v30 }
 0x499   : > { %v2450_v36 = vpop.xlane.xlu1 %2449  ;;  %3390 = vrcp.f32 %v2467_v43  ;;  %v3385_v31 = vpop.eup %3384 }
 0x49a   : > { %v2466_v33 = vadd.f32 %v2460_v9, %v2450_v36  ;;  %v2475_v52 = vmul.f32 %v3385_v31, %v2463_v15 }
 0x49c   : > { %3392 = vrcp.f32 %v2466_v33  ;;  %v2481_v39 = vsub.f32 2.0, %v2475_v52 }
 0x49d   : > { %v2456_v22 = vpop.xlane.xlu1 %2455  ;;  %v3387_v11 = vpop.eup %3386 }
 0x49e   : > { %v2468_v42 = vadd.f32 %v2462_v4, %v2456_v22  ;;  %v2487_v47 = vmul.f32 %v3385_v31, %v2481_v39  ;;  %v2477_v49 = vmul.f32 %v3387_v11, %v2465_v32 }
 0x4a0   : > { %3394 = vrcp.f32 %v2468_v42  ;;  %v2493_v58 = vmul.f32 %v4263_v54, %v2487_v47  ;;  %v2483_v20 = vsub.f32 2.0, %v2477_v49  ;;  %v2499_v12 = vmul.f32 %v2487_v47, %v2457_v24 }
 0x4a2   : > { %v3389_v5 = vpop.eup %3388  ;;  %v2489_v50 = vmul.f32 %v3387_v11, %v2483_v20  ;;  %3243 = vmatmul.mubr.msk.f32.vlgmr.msra.gmra.mrb[18].mxu0 %vm974_vm9, %v2493_v58 }
 0x4a3   : > { %v3391_v2 = vpop.eup %3390  ;;  %v2476_v62 = vmul.f32 %v3389_v5, %v2464_v30  ;;  %3251 = vmatpush3.msra.mxu0 %v4019_v38  ;;  %3252 = vmatprep.mubr.msk.f32.mxu0 %vm3498_vm0, %v3497_v0 }
 0x4a4   : > { %v2479_v37 = vmul.f32 %v3391_v2, %v2467_v43  ;;  %v2495_v51 = vmul.f32 %v4269_v17, %v2489_v50  ;;  %3260 = vmatprep.subr.mxu0 %v3497_v0  ;;  %v2501_v54 = vmul.f32 %v2489_v50, %v2459_v26 }
 0x4a5   : > { %v2482_v61 = vsub.f32 2.0, %v2476_v62 }
 0x4a6   : > { %v3393_v1 = vpop.eup %3392  ;;  %v2485_v48 = vsub.f32 2.0, %v2479_v37  ;;  %3253 = vmatmul.mubr.msk.f32.vlgmr.msra.gmra.mrb[20].mxu0 %vm974_vm9, %v2495_v51 }
 0x4a7   : > { %v2488_v40 = vmul.f32 %v3389_v5, %v2482_v61  ;;  %v2478_v21 = vmul.f32 %v3393_v1, %v2466_v33  ;;  %3261 = vmatpush3.msra.mxu0 %v4150_v8  ;;  %3262 = vmatprep.mubr.msk.f32.mxu0 %vm3498_vm0, %v3497_v0 }
 0x4a8   : > { %v2491_v28 = vmul.f32 %v3391_v2, %v2485_v48 }
 0x4a9   : > { %v2494_v38 = vmul.f32 %v4275_v19, %v2488_v40  ;;  %v2484_v3 = vsub.f32 2.0, %v2478_v21  ;;  %v2500_v23 = vmul.f32 %v2488_v40, %v2458_v53 }
 0x4aa   : > { %v3395_v17 = vpop.eup %3394  ;;  %v2497_v7 = vmul.f32 %v4273_v59, %v2491_v28  ;;  %v2503_v44 = vmul.f32 %v2491_v28, %v2461_v25 }
 0x4ab   : > { %v2490_v10 = vmul.f32 %v3393_v1, %v2484_v3  ;;  %v2480_v14 = vmul.f32 %v3395_v17, %v2468_v42  ;;  %3248 = vmatmul.mubr.msk.f32.vlgmr.msra.gmra.mrb[18].mxu1 %vm974_vm9, %v2494_v38 }
 0x4ac   : > { %3256 = vmatpush3.msra.mxu1 %v4186_v6  ;;  %3257 = vmatprep.mubr.msk.f32.mxu1 %vm3498_vm0, %v3497_v0 }
 0x4ad   : > { %v2496_v8 = vmul.f32 %v4281_v18, %v2490_v10  ;;  %v2486_v60 = vsub.f32 2.0, %v2480_v14  ;;  %3265 = vmatprep.subr.mxu1 %v3497_v0  ;;  %3263 = vmatmul.mubr.msk.f32.vlgmr.msra.gmra.mrb[22].mxu0 %vm974_vm9, %v2497_v7  ;;  %v2502_v59 = vmul.f32 %v2490_v10, %v2460_v9 }
 0x4af   : > { %v2492_v19 = vmul.f32 %v3395_v17, %v2486_v60  ;;  %3258 = vmatmul.mubr.msk.f32.vlgmr.msra.gmra.mrb[20].mxu1 %vm974_vm9, %v2496_v8 }
 0x4b0   : > { %3266 = vmatpush3.msra.mxu1 %v4204_v45  ;;  %3267 = vmatprep.mubr.msk.f32.mxu1 %vm3498_vm0, %v3497_v0 }
 0x4b1   : > { %v2498_v6 = vmul.f32 %v4285_v41, %v2492_v19  ;;  %v2504_v46 = vmul.f32 %v2492_v19, %v2462_v4 }
 0x4b3   : > { %3268 = vmatmul.mubr.msk.f32.vlgmr.msra.gmra.mrb[22].mxu1 %vm974_vm9, %v2498_v6 }
 0x575   : > { %v2575_v18 = vpop.f32.mrb[18].mxu0 }
 0x576   : > { %v2576_v63 = vadd.f32 %v2575_v18, %v2499_v12  ;;  %v3244_v24 = vpop.f32.mrb[19].mxu0 }
 0x578   : > { %3086 = vst.msk [vmem:[%s4233_s16 + $0x8] sm:$0xff] %vm285_vm8, %v2576_v63 }
 0x579   : > { %v2723_v16 = vpop.f32.mrb[20].mxu0 }
 0x57a   : > { %v2724_v57 = vadd.f32 %v2723_v16, %v2501_v54  ;;  %v3254_v45 = vpop.f32.mrb[21].mxu0 }
 0x57c   : > { %3088 = vst.msk [vmem:[%s4233_s16 + $0x28] sm:$0xff] %vm285_vm8, %v2724_v57 }
 0x57e   : > { %v2649_v0 = vpop.f32.mrb[18].mxu1 }
 0x57f   : > { %v2650_v15 = vadd.f32 %v2649_v0, %v2500_v23  ;;  %v3249_v41 = vpop.f32.mrb[19].mxu1 }
 0x580   : > { %v2871_v56 = vpop.f32.mrb[22].mxu0 }
 0x581   : > { %3087 = vst.msk [vmem:[%s4233_s16 + $0x18] sm:$0xff] %vm285_vm8, %v2650_v15  ;;  %v2872_v26 = vadd.f32 %v2871_v56, %v2503_v44  ;;  %v3264_v34 = vpop.f32.mrb[23].mxu0 }
 0x582   : > { %v2797_v55 = vpop.f32.mrb[20].mxu1 }
 0x583   : > { %v2798_v32 = vadd.f32 %v2797_v55, %v2502_v59  ;;  %3090 = vst.msk [vmem:[%s4233_s16 + $0x48] sm:$0xff] %vm285_vm8, %v2872_v26  ;;  %v3259_v53 = vpop.f32.mrb[21].mxu1 }
 0x585   : > { %3089 = vst.msk [vmem:[%s4233_s16 + $0x38] sm:$0xff] %vm285_vm8, %v2798_v32 }
 0x586   : > { %v2945_v25 = vpop.f32.mrb[22].mxu1 }
 0x587   : > { %v2946_v27 = vadd.f32 %v2945_v25, %v2504_v46  ;;  %v3269_v35 = vpop.f32.mrb[23].mxu1 }
 0x589   : > { %3091 = vst.msk [vmem:[%s4233_s16 + $0x58] sm:$0xff] %vm285_vm8, %v2946_v27 }
 0x58a   : > { %3439 = shalt.err (!%p3436_p2)
}
 0x58b   : > { %s3440_s11 = scalar_lea.hbm %s4331_s30, 1536  ;;  %s3444_s19 = scalar_lea.hbm %s4380_s1, 3072 }
 0x58c   : > { %p3441_p4 = scmp.ne.s32.totalorder %s4331_s30, %s3440_s11  ;;  %p3445_p9 = scmp.lt.u32.totalorder %s4331_s30, %s4380_s1 }
 0x58d   : > { %p3446_p1 = scmp.lt.u32.totalorder %s3444_s19, %s3440_s11  ;;  %p3448_p6 = scmp.lt.u32.totalorder %s3440_s11, %s4331_s30 }
 0x58e   : > { %p3442_p5 = pnand %p3441_p4, %p4386_p11 }
 0x58f   : > { %p3447_p3 = por %p3446_p1, %p3445_p9 }
 0x590   : > { %p3443_p7 = pneg %p3442_p5 }
 0x591   : > { %p3449_p12 = por %p3448_p6, %p3447_p3 }
 0x593   : > { %p3450_p13 = pnand %p3449_p12, %p3443_p7 }
 0x595   : > { %3453 = shalt.err (!%p3450_p13)
}
 0x596   : > { %s3500_s23 = smov 128   ;;  %s3501_s26 = smov 8  }
 0x597   : > { %3274 = dma.vmem_to_hbm [thread:$0]  (%p4386_p11), %s4333_s25, 1536, %s4331_s30, %s2957_s10, %s3500_s23, %s3500_s23, %s3501_s26  }
 0x598 PF: > { %s2986_s29 = sand.u32 1, %s3480_s6   ;;  %p4387_p8 = scmp.ne.s32.totalorder %s4384_s18, 0 }
 0x599   : > { %p4388_p10 = scmp.ge.s32.totalorder %s3492_s9, 2  ;;  %s2987_s16 = scalar_lea.sflag [#allocation4], %s2986_s29 }
 0x59b   : > { %p3281_p0 = pnand %p4388_p10, %p4387_p8 }
 0x59d   : > { %3475 = dma.done.wait (!%p3281_p0), %s2987_s16, 1536  }
 0x59e   : > { %3477 = vsyncadd (!%p3281_p0), %s2987_s16, 4294965760  ;;  %p14_p2 = scmp.ge.s32.totalorder %s3537_s12, 4   ;;  %s4389_s6 = smov %s3484_s7 }
 0x59f   : > { %s4390_s7 = smov %s3488_s8  ;;  %s4391_s8 = smov %s3549_s15 }
 0x5a0   : > { %s4392_s9 = smov %s3537_s12  ;;  %16 = sbr.rel (!%p14_p2) target bundleno = 5 (0x5), region = 70 }
 0x5a7   :  { %2992 = vsyncpa [#allocation3], 1 }
 0x5a8   :  { %2994 = vsyncpa [#allocation3 + $0x1], 1 }
 0x5a9   :  { %2995 = vsyncpa [#allocation4], 1 }
 0x5aa   :  { %2997 = vsyncpa [#allocation4 + $0x1], 1 }

</bundles_post_ra>
